<compile_context>
chip_gen: v5e
topology: v5e:2x2
jax: 0.10.0
libtpu: 0.0.40
codegen_flags: <defaults>
</compile_context>

<pallas_src>
import functools

import jax
import jax.numpy as jnp
from jax import lax
from jax.experimental import pallas as pl
from jax.experimental.pallas import tpu as pltpu

COORDS_WEIGHT = 1.0   # module default
OUT_LANES = 128       # packed output: [vel(1) | force(3) | node(output_nf) | pad]


def _silu(x):
    # x * sigmoid(x): reciprocal inside sigmoid goes to the EUP slot.
    return x * jax.nn.sigmoid(x)


def egcl_kernel(
    # data
    h_ref, invc_ref, cd_ref, rad_ref, rows_ref, cols_ref, rowl_ref,
    # edge_nn (first linear split by concat segments: source / target / radial)
    we1s_ref, we1t_ref, we1r_ref, be1_ref, we2_ref, be2_ref,
    # node_nn (first linear split by concat segments: h / agg)
    wn1h_ref, wn1a_ref, bn1_ref, wn2_ref, bn2_ref,
    # coord_nn
    wc1_ref, bc1_ref, wc2_ref,
    # vel_scaling_nn
    wv1_ref, bv1_ref, wv2_ref, bv2_ref,
    # packed output
    out_ref,
    # scratch
    hs_ref, ht_ref, acc_ref,
    *, hidden_nf, output_nf,
):
    f32 = jnp.float32
    bf16 = jnp.bfloat16
    step = pl.program_id(0)
    last = pl.num_programs(0) - 1

    N = h_ref.shape[0]
    TE = cd_ref.shape[0]
    H = hidden_nf
    acc_lanes = acc_ref.shape[1]

    # ---- one-time init: zero accumulator, project h through the first edge
    # ---- linear (source / target halves) into bf16 scratch ------------------
    @pl.when(step == 0)
    def _():
        acc_ref[...] = jnp.zeros_like(acc_ref)
        h0 = h_ref[...]
        hs_ref[...] = jnp.dot(
            h0, we1s_ref[...], preferred_element_type=f32).astype(bf16)
        ht_ref[...] = jnp.dot(
            h0, we1t_ref[...], preferred_element_type=f32).astype(bf16)

    # ---- build one-hot tiles in-kernel (no HBM stream) ----------------------
    row_sub = rows_ref[...]                                   # [TE, 1] int32
    col_sub = cols_ref[...]                                   # [TE, 1] int32
    row_lane = rowl_ref[0]                                    # [1, TE] int32
    node_lane = lax.broadcasted_iota(jnp.int32, (TE, N), 1)
    R = (node_lane == row_sub).astype(bf16)                   # [TE, N] gather(row)
    C = (node_lane == col_sub).astype(bf16)                   # [TE, N] gather(col)
    node_sub = lax.broadcasted_iota(jnp.int32, (N, TE), 0)
    RT = (node_sub == row_lane).astype(bf16)                  # [N, TE] scatter(row)
    # padded edges carry index -1 -> all-zero one-hot rows/cols -> no effect.

    # ---- edge model: gathers fused with the first linear --------------------
    src = jnp.dot(R, hs_ref[...], preferred_element_type=f32)   # h[row]@We1s [TE,H]
    tgt = jnp.dot(C, ht_ref[...], preferred_element_type=f32)   # h[col]@We1t [TE,H]
    radial = rad_ref[...]                                        # [TE, 1]
    e1 = _silu(src + tgt + radial * we1r_ref[...] + be1_ref[...])
    edge_attr = _silu(
        jnp.dot(e1.astype(bf16), we2_ref[...], preferred_element_type=f32)
        + be2_ref[...])                                           # [TE, H]

    # ---- coord model (force scores for this edge tile) ----------------------
    c1 = _silu(
        jnp.dot(edge_attr.astype(bf16), wc1_ref[...], preferred_element_type=f32)
        + bc1_ref[...])
    score = jnp.dot(c1.astype(bf16), wc2_ref[...],
                    preferred_element_type=f32)                   # [TE, 1]
    trans = jnp.clip(cd_ref[...] * score, -100.0, 100.0)          # [TE, 3]

    # ---- fused lane-dense scatter-add: RT @ [edge_attr | trans | 0] ---------
    pad = acc_lanes - (H + 3)
    parts = [edge_attr.astype(bf16), trans.astype(bf16)]
    if pad > 0:
        parts.append(jnp.zeros((TE, pad), bf16))
    packed = jnp.concatenate(parts, axis=1)                       # [TE, acc_lanes]
    acc_ref[...] += jnp.dot(RT, packed, preferred_element_type=f32)

    # ---- finalize on last edge tile ------------------------------------------
    @pl.when(step == last)
    def _():
        h = h_ref[...]
        acc = acc_ref[...]
        agg = acc[:, :H]                         # segment_sum(edge_attr)  [N, H]
        sum_trans = acc[:, H:H + 3]              # segment_sum(trans)      [N, 3]

        # unsorted_segment_mean * coords_weight (degrees precomputed on host)
        force = sum_trans * invc_ref[...] * COORDS_WEIGHT

        # vel_scaling_nn(h)  (all f32)
        v1 = _silu(jnp.dot(h, wv1_ref[...], preferred_element_type=f32)
                   + bv1_ref[...])
        vel = jnp.dot(v1, wv2_ref[...], preferred_element_type=f32) + bv2_ref[...]

        # node_nn(cat([h, agg]))
        n1 = _silu(jnp.dot(h, wn1h_ref[...], preferred_element_type=f32)
                   + jnp.dot(agg, wn1a_ref[...], preferred_element_type=f32)
                   + bn1_ref[...])
        node = jnp.dot(n1, wn2_ref[...], preferred_element_type=f32) + bn2_ref[...]

        out_pad = OUT_LANES - (1 + 3 + output_nf)
        out_parts = [vel, force, node]
        if out_pad > 0:
            out_parts.append(jnp.zeros((N, out_pad), f32))
        out_ref[...] = jnp.concatenate(out_parts, axis=1)


PARAM_ORDER = [
    "we1s", "we1t", "we1r", "be1", "we2", "be2",
    "wn1h", "wn1a", "bn1", "wn2", "bn2",
    "wc1", "bc1", "wc2",
    "wv1", "bv1", "wv2", "bv2",
]
_BF16_PARAMS = ("we2", "wc1", "wc2")   # edge/coord MLP weights fed to bf16 MXU


def _nbytes(shape, dtype):
    n = 1
    for d in shape:
        n *= int(d)
    return n * jnp.dtype(dtype).itemsize


def _vmem_capacity_bytes():
    try:
        info = pltpu.get_tpu_info()
        cap = getattr(info, "vmem_capacity_bytes", None)
        if cap:
            return int(cap)
    except Exception:
        pass
    return 64 * 1024 * 1024  # conservative (v7x per-TC VMEM)


def egcl_forward(h, coord_diff, row, col, params, output_nf, *, edge_tile=None):
    N, F = h.shape
    E = row.shape[0]
    H = params["we2"].shape[0]
    assert output_nf <= OUT_LANES - 4, "packed output assumes output_nf <= 124"

    vmem_cap = _vmem_capacity_bytes()

    # Edge tile size (multiple of 8 sublanes), generation-aware: the in-kernel
    # one-hot tiles (R, C bf16 [TE,N], RT bf16 [N,TE]) plus edge activations are
    # the dominant compute-value footprint, so size TE against actual VMEM.
    if edge_tile is None:
        budget = vmem_cap // 6
        per_edge = 6 * N + 2 * OUT_LANES + 8 * H
        te = budget // max(per_edge, 1)
        te = int(min(max(te, 128), 2048 if vmem_cap >= (96 << 20) else 1024))
        edge_tile = te
    TE = max(8, (int(edge_tile) // 8) * 8)
    TE = min(TE, ((E + 7) // 8) * 8)
    E_pad = ((E + TE - 1) // TE) * TE
    num_tiles = E_pad // TE
    pad_e = E_pad - E

    # Pad edges with index -1 -> all-zero one-hot rows, padded edges contribute
    # nothing to any scatter (and trans = 0 since coord_diff = 0).
    row_i = row.astype(jnp.int32)
    col_i = col.astype(jnp.int32)
    if pad_e:
        row_p = jnp.concatenate([row_i, jnp.full((pad_e,), -1, jnp.int32)])
        col_p = jnp.concatenate([col_i, jnp.full((pad_e,), -1, jnp.int32)])
        cd_p = jnp.concatenate(
            [coord_diff, jnp.zeros((pad_e, 3), coord_diff.dtype)])
    else:
        row_p, col_p, cd_p = row_i, col_i, coord_diff

    rows2 = row_p.reshape(E_pad, 1)                    # sublane layout (gather)
    cols2 = col_p.reshape(E_pad, 1)
    rowl3 = row_p.reshape(num_tiles, 1, TE)            # lane layout (scatter)
    rad_p = jnp.sum(cd_p * cd_p, axis=1, keepdims=True)  # radial, precomputed

    # Reciprocal node degrees (segment-mean denominator).
    deg = jnp.zeros((N,), jnp.float32).at[row].add(1.0)
    inv_cnt = (1.0 / jnp.maximum(deg, 1.0)).reshape(N, 1)

    # Accumulator lane width: round (H + 3) up to a lane multiple of 128 so the
    # per-step accumulator update is a full-width (unmasked) store.
    acc_lanes = ((H + 3 + 127) // 128) * 128

    # One-time bf16 copies of the edge/coord MLP weights (MXU is native bf16).
    param_vals = []
    for k in PARAM_ORDER:
        v = params[k]
        if k in _BF16_PARAMS:
            v = v.astype(jnp.bfloat16)
        param_vals.append(v)

    def full_spec(a):
        return pl.BlockSpec(a.shape, lambda e, _nd=a.ndim: (0,) * _nd)

    in_specs = [
        pl.BlockSpec((N, F), lambda e: (0, 0)),          # h (resident)
        pl.BlockSpec((N, 1), lambda e: (0, 0)),          # inv degree (resident)
        pl.BlockSpec((TE, 3), lambda e: (e, 0)),         # coord_diff tile
        pl.BlockSpec((TE, 1), lambda e: (e, 0)),         # radial tile
        pl.BlockSpec((TE, 1), lambda e: (e, 0)),         # row idx (sublane layout)
        pl.BlockSpec((TE, 1), lambda e: (e, 0)),         # col idx (sublane layout)
        pl.BlockSpec((1, 1, TE), lambda e: (e, 0, 0)),   # row idx (lane layout)
    ] + [full_spec(v) for v in param_vals]

    out_spec = pl.BlockSpec((N, OUT_LANES), lambda e: (0, 0))
    out_shape = jax.ShapeDtypeStruct((N, OUT_LANES), jnp.float32)

    # Cost estimate (advisory).
    flops = (
        2 * 2 * N * F * H                                  # hs/ht projections
        + 2 * 2 * E_pad * N * H                            # fused gathers+linear
        + 2 * E_pad * H * H                                # edge_nn 2nd linear
        + 2 * E_pad * (H * H + H)                          # coord_nn
        + 2 * E_pad * N * acc_lanes                        # fused scatter
        + 2 * N * ((F + H) * H + H * output_nf)            # node_nn
        + 2 * N * (F * H + H)                              # vel_scaling_nn
    )
    transcendentals = 3 * E_pad * H + 2 * N * H
    bytes_accessed = (
        _nbytes((N, F), jnp.float32) + _nbytes((N, 1), jnp.float32)
        + _nbytes((E_pad, 3), jnp.float32) + _nbytes((E_pad, 1), jnp.float32)
        + 3 * _nbytes((E_pad,), jnp.int32)
        + sum(_nbytes(v.shape, v.dtype) for v in param_vals)
        + _nbytes((N, OUT_LANES), jnp.float32)
    )

    kernel = functools.partial(egcl_kernel, hidden_nf=H, output_nf=output_nf)

    vmem_limit = int(min(100 << 20, max(32 << 20, vmem_cap - (16 << 20))))

    out = pl.pallas_call(
        kernel,
        out_shape=out_shape,
        grid=(num_tiles,),
        in_specs=in_specs,
        out_specs=out_spec,
        scratch_shapes=[
            pltpu.VMEM((N, H), jnp.bfloat16),       # hs = h @ We1_src
            pltpu.VMEM((N, H), jnp.bfloat16),       # ht = h @ We1_tgt
            pltpu.VMEM((N, acc_lanes), jnp.float32),  # [agg | sum_trans | pad]
        ],
        compiler_params=pltpu.CompilerParams(
            dimension_semantics=("arbitrary",),
            vmem_limit_bytes=vmem_limit,
        ),
        cost_estimate=pl.CostEstimate(
            flops=int(flops),
            transcendentals=int(transcendentals),
            bytes_accessed=int(bytes_accessed),
        ),
    )(h, inv_cnt, cd_p, rad_p, rows2, cols2, rowl3, *param_vals)

    vel = out[:, 0:1]
    force = out[:, 1:4]
    node = out[:, 4:4 + output_nf]
    return vel, force, node


def init_params(key, input_nf, output_nf, hidden_nf):
    """Deterministic, PyTorch-Linear-like init (uniform +/- 1/sqrt(fan_in))."""
    keys = iter(jax.random.split(key, 32))

    def lin_w(fin, fout, scale=None):
        if scale is None:
            scale = 1.0 / (fin ** 0.5)
        return jax.random.uniform(next(keys), (fin, fout), jnp.float32, -scale, scale)

    def lin_b(fin, fout):
        scale = 1.0 / (fin ** 0.5)
        return jax.random.uniform(next(keys), (1, fout), jnp.float32, -scale, scale)

    p = {}
    # edge_nn: Linear(2*F + 1 -> H), SiLU, Linear(H -> H), SiLU
    we1 = lin_w(2 * input_nf + 1, hidden_nf)
    p["we1s"] = we1[:input_nf]
    p["we1t"] = we1[input_nf:2 * input_nf]
    p["we1r"] = we1[2 * input_nf:2 * input_nf + 1]
    p["be1"] = lin_b(2 * input_nf + 1, hidden_nf)
    p["we2"] = lin_w(hidden_nf, hidden_nf)
    p["be2"] = lin_b(hidden_nf, hidden_nf)
    # node_nn: Linear(H + F -> H), SiLU, Linear(H -> output_nf); cat order [h, agg]
    wn1 = lin_w(hidden_nf + input_nf, hidden_nf)
    p["wn1h"] = wn1[:input_nf]
    p["wn1a"] = wn1[input_nf:]
    p["bn1"] = lin_b(hidden_nf + input_nf, hidden_nf)
    p["wn2"] = lin_w(hidden_nf, output_nf)
    p["bn2"] = lin_b(hidden_nf, output_nf)
    # coord_nn: Linear(H -> H), SiLU, Linear(H -> 1, bias=False, xavier gain=0.001)
    p["wc1"] = lin_w(hidden_nf, hidden_nf)
    p["bc1"] = lin_b(hidden_nf, hidden_nf)
    xav = 0.001 * (6.0 / (hidden_nf + 1)) ** 0.5
    p["wc2"] = lin_w(hidden_nf, 1, scale=xav)
    # vel_scaling_nn: Linear(F -> H), SiLU, Linear(H -> 1)
    p["wv1"] = lin_w(input_nf, hidden_nf)
    p["bv1"] = lin_b(input_nf, hidden_nf)
    p["wv2"] = lin_w(hidden_nf, 1)
    p["bv2"] = lin_b(hidden_nf, 1)
    return p


def egcl_reference(h, coord_diff, row, col, p):
    """Pure-JAX f32 reference with explicit gather/scatter (PyTorch semantics)."""
    N = h.shape[0]
    radial = jnp.sum(coord_diff ** 2, axis=1, keepdims=True)
    edge_in = jnp.concatenate([h[row], h[col], radial], axis=1)
    we1 = jnp.concatenate([p["we1s"], p["we1t"], p["we1r"]], axis=0)
    e1 = jax.nn.silu(edge_in @ we1 + p["be1"])
    edge_attr = jax.nn.silu(e1 @ p["we2"] + p["be2"])

    vel = jax.nn.silu(h @ p["wv1"] + p["bv1"]) @ p["wv2"] + p["bv2"]

    score = jax.nn.silu(edge_attr @ p["wc1"] + p["bc1"]) @ p["wc2"]
    trans = jnp.clip(coord_diff * score, -100.0, 100.0)
    sum_t = jnp.zeros((N, 3), jnp.float32).at[row].add(trans)
    cnt = jnp.zeros((N, 1), jnp.float32).at[row].add(1.0)
    force = (sum_t / jnp.maximum(cnt, 1.0)) * COORDS_WEIGHT

    agg = jnp.zeros((N, edge_attr.shape[1]), jnp.float32).at[row].add(edge_attr)
    wn1 = jnp.concatenate([p["wn1h"], p["wn1a"]], axis=0)
    n_in = jnp.concatenate([h, agg], axis=1)
    node = jax.nn.silu(n_in @ wn1 + p["bn1"]) @ p["wn2"] + p["bn2"]
    return vel, force, node


if __name__ == "__main__":
    input_nf, output_nf, hidden_nf = 8, 8, 32
    N = 8  # nodes, fully connected graph without self loops -> E = 56 edges

    key = jax.random.PRNGKey(0)
    k_h, k_cd, k_p = jax.random.split(key, 3)

    # fully-connected edge list (no self loops)
    idx = jnp.arange(N)
    row_all = jnp.repeat(idx, N)
    col_all = jnp.tile(idx, N)
    keep = row_all != col_all
    row = row_all[keep]
    col = col_all[keep]

    h = jax.random.normal(k_h, (N, input_nf), jnp.float32)
    coord_diff = jax.random.normal(k_cd, (row.shape[0], 3), jnp.float32)

    params = init_params(k_p, input_nf, output_nf, hidden_nf)

    # edge_tile=32 -> E padded 56 -> 64, two grid steps (exercises accumulation
    # and the step==0 init / step==last finalize paths).
    vel, force, node = egcl_forward(
        h, coord_diff, row, col, params, output_nf, edge_tile=32)
    jax.block_until_ready((vel, force, node))

    vel_r, force_r, node_r = egcl_reference(h, coord_diff, row, col, params)
    # vel path is pure f32 -> tight tolerance; edge/coord/scatter paths use
    # bf16 MXU operands with f32 accumulation -> looser tolerance.
    assert jnp.allclose(vel, vel_r, atol=1e-4, rtol=1e-4)
    assert jnp.allclose(force, force_r, atol=5e-2, rtol=5e-2)
    assert jnp.allclose(node, node_r, atol=5e-2, rtol=5e-2)

    print("KERNEL_OK")
</pallas_src>

<mosaic_0001>
module attributes {stable_mosaic.version = 11 : i64} {
  func.func @egcl_kernel(%arg0: i32, %arg1: memref<8x8xf32, #tpu.memory_space<vmem>>, %arg2: memref<8x1xf32, #tpu.memory_space<vmem>>, %arg3: memref<32x3xf32, #tpu.memory_space<vmem>>, %arg4: memref<32x1xf32, #tpu.memory_space<vmem>>, %arg5: memref<32x1xi32, #tpu.memory_space<vmem>>, %arg6: memref<32x1xi32, #tpu.memory_space<vmem>>, %arg7: memref<1x1x32xi32, #tpu.memory_space<vmem>>, %arg8: memref<8x32xf32, #tpu.memory_space<vmem>>, %arg9: memref<8x32xf32, #tpu.memory_space<vmem>>, %arg10: memref<1x32xf32, #tpu.memory_space<vmem>>, %arg11: memref<1x32xf32, #tpu.memory_space<vmem>>, %arg12: memref<32x32xbf16, #tpu.memory_space<vmem>>, %arg13: memref<1x32xf32, #tpu.memory_space<vmem>>, %arg14: memref<8x32xf32, #tpu.memory_space<vmem>>, %arg15: memref<32x32xf32, #tpu.memory_space<vmem>>, %arg16: memref<1x32xf32, #tpu.memory_space<vmem>>, %arg17: memref<32x8xf32, #tpu.memory_space<vmem>>, %arg18: memref<1x8xf32, #tpu.memory_space<vmem>>, %arg19: memref<32x32xbf16, #tpu.memory_space<vmem>>, %arg20: memref<1x32xf32, #tpu.memory_space<vmem>>, %arg21: memref<32x1xbf16, #tpu.memory_space<vmem>>, %arg22: memref<8x32xf32, #tpu.memory_space<vmem>>, %arg23: memref<1x32xf32, #tpu.memory_space<vmem>>, %arg24: memref<32x1xf32, #tpu.memory_space<vmem>>, %arg25: memref<1x1xf32, #tpu.memory_space<vmem>>, %arg26: memref<8x128xf32, #tpu.memory_space<vmem>>, %arg27: memref<8x32xbf16, #tpu.memory_space<vmem>>, %arg28: memref<8x32xbf16, #tpu.memory_space<vmem>>, %arg29: memref<8x128xf32, #tpu.memory_space<vmem>>) attributes {dimension_semantics = [#tpu.dimension_semantics<arbitrary>], iteration_bounds = array<i64: 2>, scalar_prefetch = 0 : i64, scratch_operands = 3 : i64, tpu.core_type = #tpu.core_type<tc>, window_params = [{pipeline_mode = #tpu.pipeline_mode<synchronous>, transform_indices = @transform_0, window_bounds = array<i64: 8, 8>}, {pipeline_mode = #tpu.pipeline_mode<synchronous>, transform_indices = @transform_1, window_bounds = array<i64: 8, 1>}, {transform_indices = @transform_2, window_bounds = array<i64: 32, 3>}, {transform_indices = @transform_3, window_bounds = array<i64: 32, 1>}, {transform_indices = @transform_4, window_bounds = array<i64: 32, 1>}, {transform_indices = @transform_5, window_bounds = array<i64: 32, 1>}, {transform_indices = @transform_6, window_bounds = array<i64: 1, 1, 32>}, {pipeline_mode = #tpu.pipeline_mode<synchronous>, transform_indices = @transform_7, window_bounds = array<i64: 8, 32>}, {pipeline_mode = #tpu.pipeline_mode<synchronous>, transform_indices = @transform_8, window_bounds = array<i64: 8, 32>}, {pipeline_mode = #tpu.pipeline_mode<synchronous>, transform_indices = @transform_9, window_bounds = array<i64: 1, 32>}, {pipeline_mode = #tpu.pipeline_mode<synchronous>, transform_indices = @transform_10, window_bounds = array<i64: 1, 32>}, {pipeline_mode = #tpu.pipeline_mode<synchronous>, transform_indices = @transform_11, window_bounds = array<i64: 32, 32>}, {pipeline_mode = #tpu.pipeline_mode<synchronous>, transform_indices = @transform_12, window_bounds = array<i64: 1, 32>}, {pipeline_mode = #tpu.pipeline_mode<synchronous>, transform_indices = @transform_13, window_bounds = array<i64: 8, 32>}, {pipeline_mode = #tpu.pipeline_mode<synchronous>, transform_indices = @transform_14, window_bounds = array<i64: 32, 32>}, {pipeline_mode = #tpu.pipeline_mode<synchronous>, transform_indices = @transform_15, window_bounds = array<i64: 1, 32>}, {pipeline_mode = #tpu.pipeline_mode<synchronous>, transform_indices = @transform_16, window_bounds = array<i64: 32, 8>}, {pipeline_mode = #tpu.pipeline_mode<synchronous>, transform_indices = @transform_17, window_bounds = array<i64: 1, 8>}, {pipeline_mode = #tpu.pipeline_mode<synchronous>, transform_indices = @transform_18, window_bounds = array<i64: 32, 32>}, {pipeline_mode = #tpu.pipeline_mode<synchronous>, transform_indices = @transform_19, window_bounds = array<i64: 1, 32>}, {pipeline_mode = #tpu.pipeline_mode<synchronous>, transform_indices = @transform_20, window_bounds = array<i64: 32, 1>}, {pipeline_mode = #tpu.pipeline_mode<synchronous>, transform_indices = @transform_21, window_bounds = array<i64: 8, 32>}, {pipeline_mode = #tpu.pipeline_mode<synchronous>, transform_indices = @transform_22, window_bounds = array<i64: 1, 32>}, {pipeline_mode = #tpu.pipeline_mode<synchronous>, transform_indices = @transform_23, window_bounds = array<i64: 32, 1>}, {pipeline_mode = #tpu.pipeline_mode<synchronous>, transform_indices = @transform_24, window_bounds = array<i64: 1, 1>}, {pipeline_mode = #tpu.pipeline_mode<synchronous>, transform_indices = @transform_25, window_bounds = array<i64: 8, 128>}]} {
    %c0_i32 = arith.constant 0 : i32
    %0 = arith.cmpi eq, %arg0, %c0_i32 : i32
    %1 = arith.extui %0 : i1 to i32
    %c0_i32_0 = arith.constant 0 : i32
    %2 = arith.cmpi ne, %1, %c0_i32_0 : i32
    scf.if %2 {
      %cst_45 = arith.constant 0.000000e+00 : f32
      %89 = vector.broadcast %cst_45 : f32 to vector<8x128xf32>
      %c0_46 = arith.constant 0 : index
      %c0_47 = arith.constant 0 : index
      %90 = vector.load %arg29[%c0_46, %c0_47] : memref<8x128xf32, #tpu.memory_space<vmem>>, vector<8x128xf32>
      tpu.vector_store %arg29[%c0_46, %c0_47], %89 {strides = array<i32>} : memref<8x128xf32, #tpu.memory_space<vmem>>, vector<8x128xf32>,
      %c0_48 = arith.constant 0 : index
      %c0_49 = arith.constant 0 : index
      %91 = vector.load %arg1[%c0_48, %c0_49] : memref<8x8xf32, #tpu.memory_space<vmem>>, vector<8x8xf32>
      %c0_50 = arith.constant 0 : index
      %c0_51 = arith.constant 0 : index
      %92 = vector.load %arg8[%c0_50, %c0_51] : memref<8x32xf32, #tpu.memory_space<vmem>>, vector<8x32xf32>
      %cst_52 = arith.constant dense<0.000000e+00> : vector<8x32xf32>
      %93 = tpu.matmul %91, %92, %cst_52 {dimension_numbers = #tpu.dot_dimension_numbers<[1], [0], [0], [1], [0, 0, 1, 1], [], []>} : vector<8x8xf32>, vector<8x32xf32>, vector<8x32xf32> -> vector<8x32xf32>
      %94 = arith.truncf %93 : vector<8x32xf32> to vector<8x32xbf16>
      %c0_53 = arith.constant 0 : index
      %c0_54 = arith.constant 0 : index
      %95 = vector.load %arg27[%c0_53, %c0_54] : memref<8x32xbf16, #tpu.memory_space<vmem>>, vector<8x32xbf16>
      tpu.vector_store %arg27[%c0_53, %c0_54], %94 {strides = array<i32>} : memref<8x32xbf16, #tpu.memory_space<vmem>>, vector<8x32xbf16>,
      %c0_55 = arith.constant 0 : index
      %c0_56 = arith.constant 0 : index
      %96 = vector.load %arg9[%c0_55, %c0_56] : memref<8x32xf32, #tpu.memory_space<vmem>>, vector<8x32xf32>
      %cst_57 = arith.constant dense<0.000000e+00> : vector<8x32xf32>
      %97 = tpu.matmul %91, %96, %cst_57 {dimension_numbers = #tpu.dot_dimension_numbers<[1], [0], [0], [1], [0, 0, 1, 1], [], []>} : vector<8x8xf32>, vector<8x32xf32>, vector<8x32xf32> -> vector<8x32xf32>
      %98 = arith.truncf %97 : vector<8x32xf32> to vector<8x32xbf16>
      %c0_58 = arith.constant 0 : index
      %c0_59 = arith.constant 0 : index
      %99 = vector.load %arg28[%c0_58, %c0_59] : memref<8x32xbf16, #tpu.memory_space<vmem>>, vector<8x32xbf16>
      tpu.vector_store %arg28[%c0_58, %c0_59], %98 {strides = array<i32>} : memref<8x32xbf16, #tpu.memory_space<vmem>>, vector<8x32xbf16>,
    } else {
    }
    %c0 = arith.constant 0 : index
    %c0_1 = arith.constant 0 : index
    %3 = vector.load %arg5[%c0, %c0_1] : memref<32x1xi32, #tpu.memory_space<vmem>>, vector<32x1xi32>
    %c0_2 = arith.constant 0 : index
    %c0_3 = arith.constant 0 : index
    %4 = vector.load %arg6[%c0_2, %c0_3] : memref<32x1xi32, #tpu.memory_space<vmem>>, vector<32x1xi32>
    %c0_4 = arith.constant 0 : index
    %c0_5 = arith.constant 0 : index
    %c0_6 = arith.constant 0 : index
    %5 = vector.load %arg7[%c0_4, %c0_5, %c0_6] : memref<1x1x32xi32, #tpu.memory_space<vmem>>, vector<1x1x32xi32>
    %6 = vector.shape_cast %5 : vector<1x1x32xi32> to vector<1x32xi32>
    %7 = tpu.iota {dimensions = array<i32: 1>} : vector<32x8xi32>
    %8 = vector.broadcast %3 : vector<32x1xi32> to vector<32x8xi32>
    %9 = arith.cmpi eq, %7, %8 : vector<32x8xi32>
    %10 = arith.extui %9 : vector<32x8xi1> to vector<32x8xi32>
    %11 = arith.sitofp %10 : vector<32x8xi32> to vector<32x8xf32>
    %12 = arith.truncf %11 : vector<32x8xf32> to vector<32x8xbf16>
    %13 = vector.broadcast %4 : vector<32x1xi32> to vector<32x8xi32>
    %14 = arith.cmpi eq, %7, %13 : vector<32x8xi32>
    %15 = arith.extui %14 : vector<32x8xi1> to vector<32x8xi32>
    %16 = arith.sitofp %15 : vector<32x8xi32> to vector<32x8xf32>
    %17 = arith.truncf %16 : vector<32x8xf32> to vector<32x8xbf16>
    %18 = tpu.iota {dimensions = array<i32: 0>} : vector<8x32xi32>
    %19 = vector.broadcast %6 : vector<1x32xi32> to vector<8x32xi32>
    %20 = arith.cmpi eq, %18, %19 : vector<8x32xi32>
    %21 = arith.extui %20 : vector<8x32xi1> to vector<8x32xi32>
    %22 = arith.sitofp %21 : vector<8x32xi32> to vector<8x32xf32>
    %23 = arith.truncf %22 : vector<8x32xf32> to vector<8x32xbf16>
    %c0_7 = arith.constant 0 : index
    %c0_8 = arith.constant 0 : index
    %24 = vector.load %arg27[%c0_7, %c0_8] : memref<8x32xbf16, #tpu.memory_space<vmem>>, vector<8x32xbf16>
    %cst = arith.constant dense<0.000000e+00> : vector<32x32xf32>
    %25 = tpu.matmul %12, %24, %cst {dimension_numbers = #tpu.dot_dimension_numbers<[1], [0], [0], [1], [0, 0, 1, 1], [], []>} : vector<32x8xbf16>, vector<8x32xbf16>, vector<32x32xf32> -> vector<32x32xf32>
    %c0_9 = arith.constant 0 : index
    %c0_10 = arith.constant 0 : index
    %26 = vector.load %arg28[%c0_9, %c0_10] : memref<8x32xbf16, #tpu.memory_space<vmem>>, vector<8x32xbf16>
    %cst_11 = arith.constant dense<0.000000e+00> : vector<32x32xf32>
    %27 = tpu.matmul %17, %26, %cst_11 {dimension_numbers = #tpu.dot_dimension_numbers<[1], [0], [0], [1], [0, 0, 1, 1], [], []>} : vector<32x8xbf16>, vector<8x32xbf16>, vector<32x32xf32> -> vector<32x32xf32>
    %c0_12 = arith.constant 0 : index
    %c0_13 = arith.constant 0 : index
    %28 = vector.load %arg4[%c0_12, %c0_13] : memref<32x1xf32, #tpu.memory_space<vmem>>, vector<32x1xf32>
    %29 = arith.addf %25, %27 : vector<32x32xf32>
    %c0_14 = arith.constant 0 : index
    %c0_15 = arith.constant 0 : index
    %30 = vector.load %arg10[%c0_14, %c0_15] : memref<1x32xf32, #tpu.memory_space<vmem>>, vector<1x32xf32>
    %31 = vector.broadcast %28 : vector<32x1xf32> to vector<32x32xf32>
    %32 = vector.broadcast %30 : vector<1x32xf32> to vector<32x32xf32>
    %33 = arith.mulf %31, %32 : vector<32x32xf32>
    %34 = arith.addf %29, %33 : vector<32x32xf32>
    %c0_16 = arith.constant 0 : index
    %c0_17 = arith.constant 0 : index
    %35 = vector.load %arg11[%c0_16, %c0_17] : memref<1x32xf32, #tpu.memory_space<vmem>>, vector<1x32xf32>
    %36 = vector.broadcast %35 : vector<1x32xf32> to vector<32x32xf32>
    %37 = arith.addf %34, %36 : vector<32x32xf32>
    %38 = arith.negf %37 : vector<32x32xf32>
    %39 = math.exp %38 : vector<32x32xf32>
    %cst_18 = arith.constant 1.000000e+00 : f32
    %40 = vector.broadcast %cst_18 : f32 to vector<32x32xf32>
    %41 = arith.addf %40, %39 : vector<32x32xf32>
    %42 = arith.divf %40, %41 : vector<32x32xf32>
    %43 = arith.mulf %37, %42 : vector<32x32xf32>
    %44 = arith.truncf %43 : vector<32x32xf32> to vector<32x32xbf16>
    %c0_19 = arith.constant 0 : index
    %c0_20 = arith.constant 0 : index
    %45 = vector.load %arg12[%c0_19, %c0_20] : memref<32x32xbf16, #tpu.memory_space<vmem>>, vector<32x32xbf16>
    %cst_21 = arith.constant dense<0.000000e+00> : vector<32x32xf32>
    %46 = tpu.matmul %44, %45, %cst_21 {dimension_numbers = #tpu.dot_dimension_numbers<[1], [0], [0], [1], [0, 0, 1, 1], [], []>} : vector<32x32xbf16>, vector<32x32xbf16>, vector<32x32xf32> -> vector<32x32xf32>
    %c0_22 = arith.constant 0 : index
    %c0_23 = arith.constant 0 : index
    %47 = vector.load %arg13[%c0_22, %c0_23] : memref<1x32xf32, #tpu.memory_space<vmem>>, vector<1x32xf32>
    %48 = vector.broadcast %47 : vector<1x32xf32> to vector<32x32xf32>
    %49 = arith.addf %46, %48 : vector<32x32xf32>
    %50 = arith.negf %49 : vector<32x32xf32>
    %51 = math.exp %50 : vector<32x32xf32>
    %cst_24 = arith.constant 1.000000e+00 : f32
    %52 = vector.broadcast %cst_24 : f32 to vector<32x32xf32>
    %53 = arith.addf %52, %51 : vector<32x32xf32>
    %54 = arith.divf %52, %53 : vector<32x32xf32>
    %55 = arith.mulf %49, %54 : vector<32x32xf32>
    %56 = arith.truncf %55 : vector<32x32xf32> to vector<32x32xbf16>
    %c0_25 = arith.constant 0 : index
    %c0_26 = arith.constant 0 : index
    %57 = vector.load %arg19[%c0_25, %c0_26] : memref<32x32xbf16, #tpu.memory_space<vmem>>, vector<32x32xbf16>
    %cst_27 = arith.constant dense<0.000000e+00> : vector<32x32xf32>
    %58 = tpu.matmul %56, %57, %cst_27 {dimension_numbers = #tpu.dot_dimension_numbers<[1], [0], [0], [1], [0, 0, 1, 1], [], []>} : vector<32x32xbf16>, vector<32x32xbf16>, vector<32x32xf32> -> vector<32x32xf32>
    %c0_28 = arith.constant 0 : index
    %c0_29 = arith.constant 0 : index
    %59 = vector.load %arg20[%c0_28, %c0_29] : memref<1x32xf32, #tpu.memory_space<vmem>>, vector<1x32xf32>
    %60 = vector.broadcast %59 : vector<1x32xf32> to vector<32x32xf32>
    %61 = arith.addf %58, %60 : vector<32x32xf32>
    %62 = arith.negf %61 : vector<32x32xf32>
    %63 = math.exp %62 : vector<32x32xf32>
    %cst_30 = arith.constant 1.000000e+00 : f32
    %64 = vector.broadcast %cst_30 : f32 to vector<32x32xf32>
    %65 = arith.addf %64, %63 : vector<32x32xf32>
    %66 = arith.divf %64, %65 : vector<32x32xf32>
    %67 = arith.mulf %61, %66 : vector<32x32xf32>
    %68 = arith.truncf %67 : vector<32x32xf32> to vector<32x32xbf16>
    %c0_31 = arith.constant 0 : index
    %c0_32 = arith.constant 0 : index
    %69 = vector.load %arg21[%c0_31, %c0_32] : memref<32x1xbf16, #tpu.memory_space<vmem>>, vector<32x1xbf16>
    %cst_33 = arith.constant dense<0.000000e+00> : vector<32x1xf32>
    %70 = tpu.matmul %68, %69, %cst_33 {dimension_numbers = #tpu.dot_dimension_numbers<[1], [0], [0], [1], [0, 0, 1, 1], [], []>} : vector<32x32xbf16>, vector<32x1xbf16>, vector<32x1xf32> -> vector<32x1xf32>
    %c0_34 = arith.constant 0 : index
    %c0_35 = arith.constant 0 : index
    %71 = vector.load %arg3[%c0_34, %c0_35] : memref<32x3xf32, #tpu.memory_space<vmem>>, vector<32x3xf32>
    %72 = vector.broadcast %70 : vector<32x1xf32> to vector<32x3xf32>
    %73 = arith.mulf %71, %72 : vector<32x3xf32>
    %cst_36 = arith.constant -1.000000e+02 : f32
    %cst_37 = arith.constant 1.000000e+02 : f32
    %74 = vector.broadcast %cst_36 : f32 to vector<32x3xf32>
    %75 = arith.maximumf %74, %73 : vector<32x3xf32>
    %76 = vector.broadcast %cst_37 : f32 to vector<32x3xf32>
    %77 = arith.minimumf %76, %75 : vector<32x3xf32>
    %78 = arith.truncf %55 : vector<32x32xf32> to vector<32x32xbf16>
    %79 = arith.truncf %77 : vector<32x3xf32> to vector<32x3xbf16>
    %cst_38 = arith.constant 0.000000e+00 : bf16
    %80 = vector.broadcast %cst_38 : bf16 to vector<32x93xbf16>
    %81 = tpu.concatenate %78, %79, %80 in 1 : vector<32x32xbf16>, vector<32x3xbf16>, vector<32x93xbf16> -> vector<32x128xbf16>
    %c0_39 = arith.constant 0 : index
    %c0_40 = arith.constant 0 : index
    %82 = vector.load %arg29[%c0_39, %c0_40] : memref<8x128xf32, #tpu.memory_space<vmem>>, vector<8x128xf32>
    %cst_41 = arith.constant dense<0.000000e+00> : vector<8x128xf32>
    %83 = tpu.matmul %23, %81, %cst_41 {dimension_numbers = #tpu.dot_dimension_numbers<[1], [0], [0], [1], [0, 0, 1, 1], [], []>} : vector<8x32xbf16>, vector<32x128xbf16>, vector<8x128xf32> -> vector<8x128xf32>
    %84 = arith.addf %82, %83 : vector<8x128xf32>
    %c0_42 = arith.constant 0 : index
    %c0_43 = arith.constant 0 : index
    %85 = vector.load %arg29[%c0_42, %c0_43] : memref<8x128xf32, #tpu.memory_space<vmem>>, vector<8x128xf32>
    tpu.vector_store %arg29[%c0_42, %c0_43], %84 {strides = array<i32>} : memref<8x128xf32, #tpu.memory_space<vmem>>, vector<8x128xf32>,
    %c1_i32 = arith.constant 1 : i32
    %86 = arith.cmpi eq, %arg0, %c1_i32 : i32
    %87 = arith.extui %86 : i1 to i32
    %c0_i32_44 = arith.constant 0 : i32
    %88 = arith.cmpi ne, %87, %c0_i32_44 : i32
    scf.if %88 {
      %c0_45 = arith.constant 0 : index
      %c0_46 = arith.constant 0 : index
      %89 = vector.load %arg1[%c0_45, %c0_46] : memref<8x8xf32, #tpu.memory_space<vmem>>, vector<8x8xf32>
      %c0_47 = arith.constant 0 : index
      %c0_48 = arith.constant 0 : index
      %90 = vector.load %arg29[%c0_47, %c0_48] : memref<8x128xf32, #tpu.memory_space<vmem>>, vector<8x128xf32>
      %91 = vector.extract_strided_slice %90 {offsets = [0, 0], sizes = [8, 32], strides = [1, 1]} : vector<8x128xf32> to vector<8x32xf32>
      %92 = vector.extract_strided_slice %90 {offsets = [0, 32], sizes = [8, 3], strides = [1, 1]} : vector<8x128xf32> to vector<8x3xf32>
      %c0_49 = arith.constant 0 : index
      %c0_50 = arith.constant 0 : index
      %93 = vector.load %arg2[%c0_49, %c0_50] : memref<8x1xf32, #tpu.memory_space<vmem>>, vector<8x1xf32>
      %94 = vector.broadcast %93 : vector<8x1xf32> to vector<8x3xf32>
      %95 = arith.mulf %92, %94 : vector<8x3xf32>
      %cst_51 = arith.constant 1.000000e+00 : f32
      %96 = vector.broadcast %cst_51 : f32 to vector<8x3xf32>
      %97 = arith.mulf %95, %96 : vector<8x3xf32>
      %c0_52 = arith.constant 0 : index
      %c0_53 = arith.constant 0 : index
      %98 = vector.load %arg22[%c0_52, %c0_53] : memref<8x32xf32, #tpu.memory_space<vmem>>, vector<8x32xf32>
      %cst_54 = arith.constant dense<0.000000e+00> : vector<8x32xf32>
      %99 = tpu.matmul %89, %98, %cst_54 {dimension_numbers = #tpu.dot_dimension_numbers<[1], [0], [0], [1], [0, 0, 1, 1], [], []>} : vector<8x8xf32>, vector<8x32xf32>, vector<8x32xf32> -> vector<8x32xf32>
      %c0_55 = arith.constant 0 : index
      %c0_56 = arith.constant 0 : index
      %100 = vector.load %arg23[%c0_55, %c0_56] : memref<1x32xf32, #tpu.memory_space<vmem>>, vector<1x32xf32>
      %101 = vector.broadcast %100 : vector<1x32xf32> to vector<8x32xf32>
      %102 = arith.addf %99, %101 : vector<8x32xf32>
      %103 = arith.negf %102 : vector<8x32xf32>
      %104 = math.exp %103 : vector<8x32xf32>
      %cst_57 = arith.constant 1.000000e+00 : f32
      %105 = vector.broadcast %cst_57 : f32 to vector<8x32xf32>
      %106 = arith.addf %105, %104 : vector<8x32xf32>
      %107 = arith.divf %105, %106 : vector<8x32xf32>
      %108 = arith.mulf %102, %107 : vector<8x32xf32>
      %c0_58 = arith.constant 0 : index
      %c0_59 = arith.constant 0 : index
      %109 = vector.load %arg24[%c0_58, %c0_59] : memref<32x1xf32, #tpu.memory_space<vmem>>, vector<32x1xf32>
      %cst_60 = arith.constant dense<0.000000e+00> : vector<8x1xf32>
      %110 = tpu.matmul %108, %109, %cst_60 {dimension_numbers = #tpu.dot_dimension_numbers<[1], [0], [0], [1], [0, 0, 1, 1], [], []>} : vector<8x32xf32>, vector<32x1xf32>, vector<8x1xf32> -> vector<8x1xf32>
      %c0_61 = arith.constant 0 : index
      %c0_62 = arith.constant 0 : index
      %111 = vector.load %arg25[%c0_61, %c0_62] : memref<1x1xf32, #tpu.memory_space<vmem>>, vector<1x1xf32>
      %112 = vector.broadcast %111 : vector<1x1xf32> to vector<8x1xf32>
      %113 = arith.addf %110, %112 : vector<8x1xf32>
      %c0_63 = arith.constant 0 : index
      %c0_64 = arith.constant 0 : index
      %114 = vector.load %arg14[%c0_63, %c0_64] : memref<8x32xf32, #tpu.memory_space<vmem>>, vector<8x32xf32>
      %cst_65 = arith.constant dense<0.000000e+00> : vector<8x32xf32>
      %115 = tpu.matmul %89, %114, %cst_65 {dimension_numbers = #tpu.dot_dimension_numbers<[1], [0], [0], [1], [0, 0, 1, 1], [], []>} : vector<8x8xf32>, vector<8x32xf32>, vector<8x32xf32> -> vector<8x32xf32>
      %c0_66 = arith.constant 0 : index
      %c0_67 = arith.constant 0 : index
      %116 = vector.load %arg15[%c0_66, %c0_67] : memref<32x32xf32, #tpu.memory_space<vmem>>, vector<32x32xf32>
      %cst_68 = arith.constant dense<0.000000e+00> : vector<8x32xf32>
      %117 = tpu.matmul %91, %116, %cst_68 {dimension_numbers = #tpu.dot_dimension_numbers<[1], [0], [0], [1], [0, 0, 1, 1], [], []>} : vector<8x32xf32>, vector<32x32xf32>, vector<8x32xf32> -> vector<8x32xf32>
      %118 = arith.addf %115, %117 : vector<8x32xf32>
      %c0_69 = arith.constant 0 : index
      %c0_70 = arith.constant 0 : index
      %119 = vector.load %arg16[%c0_69, %c0_70] : memref<1x32xf32, #tpu.memory_space<vmem>>, vector<1x32xf32>
      %120 = vector.broadcast %119 : vector<1x32xf32> to vector<8x32xf32>
      %121 = arith.addf %118, %120 : vector<8x32xf32>
      %122 = arith.negf %121 : vector<8x32xf32>
      %123 = math.exp %122 : vector<8x32xf32>
      %cst_71 = arith.constant 1.000000e+00 : f32
      %124 = vector.broadcast %cst_71 : f32 to vector<8x32xf32>
      %125 = arith.addf %124, %123 : vector<8x32xf32>
      %126 = arith.divf %124, %125 : vector<8x32xf32>
      %127 = arith.mulf %121, %126 : vector<8x32xf32>
      %c0_72 = arith.constant 0 : index
      %c0_73 = arith.constant 0 : index
      %128 = vector.load %arg17[%c0_72, %c0_73] : memref<32x8xf32, #tpu.memory_space<vmem>>, vector<32x8xf32>
      %cst_74 = arith.constant dense<0.000000e+00> : vector<8x8xf32>
      %129 = tpu.matmul %127, %128, %cst_74 {dimension_numbers = #tpu.dot_dimension_numbers<[1], [0], [0], [1], [0, 0, 1, 1], [], []>} : vector<8x32xf32>, vector<32x8xf32>, vector<8x8xf32> -> vector<8x8xf32>
      %c0_75 = arith.constant 0 : index
      %c0_76 = arith.constant 0 : index
      %130 = vector.load %arg18[%c0_75, %c0_76] : memref<1x8xf32, #tpu.memory_space<vmem>>, vector<1x8xf32>
      %131 = vector.broadcast %130 : vector<1x8xf32> to vector<8x8xf32>
      %132 = arith.addf %129, %131 : vector<8x8xf32>
      %cst_77 = arith.constant 0.000000e+00 : f32
      %133 = vector.broadcast %cst_77 : f32 to vector<8x116xf32>
      %134 = tpu.concatenate %113, %97, %132, %133 in 1 : vector<8x1xf32>, vector<8x3xf32>, vector<8x8xf32>, vector<8x116xf32> -> vector<8x128xf32>
      %c0_78 = arith.constant 0 : index
      %c0_79 = arith.constant 0 : index
      %135 = vector.load %arg26[%c0_78, %c0_79] : memref<8x128xf32, #tpu.memory_space<vmem>>, vector<8x128xf32>
      tpu.vector_store %arg26[%c0_78, %c0_79], %134 {strides = array<i32>} : memref<8x128xf32, #tpu.memory_space<vmem>>, vector<8x128xf32>,
    } else {
    }
    return
  }
  func.func @transform_0(%arg0: i32) -> (i32, i32) {
    %c0_i32 = arith.constant 0 : i32
    %c0_i32_0 = arith.constant 0 : i32
    %c0_i32_1 = arith.constant 0 : i32
    return %c0_i32, %c0_i32_0 : i32, i32
  }
  func.func @transform_1(%arg0: i32) -> (i32, i32) {
    %c0_i32 = arith.constant 0 : i32
    %c0_i32_0 = arith.constant 0 : i32
    %c0_i32_1 = arith.constant 0 : i32
    return %c0_i32, %c0_i32_0 : i32, i32
  }
  func.func @transform_2(%arg0: i32) -> (i32, i32) {
    %c0_i32 = arith.constant 0 : i32
    %c0_i32_0 = arith.constant 0 : i32
    return %arg0, %c0_i32 : i32, i32
  }
  func.func @transform_3(%arg0: i32) -> (i32, i32) {
    %c0_i32 = arith.constant 0 : i32
    %c0_i32_0 = arith.constant 0 : i32
    return %arg0, %c0_i32 : i32, i32
  }
  func.func @transform_4(%arg0: i32) -> (i32, i32) {
    %c0_i32 = arith.constant 0 : i32
    %c0_i32_0 = arith.constant 0 : i32
    return %arg0, %c0_i32 : i32, i32
  }
  func.func @transform_5(%arg0: i32) -> (i32, i32) {
    %c0_i32 = arith.constant 0 : i32
    %c0_i32_0 = arith.constant 0 : i32
    return %arg0, %c0_i32 : i32, i32
  }
  func.func @transform_6(%arg0: i32) -> (i32, i32, i32) {
    %c0_i32 = arith.constant 0 : i32
    %c0_i32_0 = arith.constant 0 : i32
    %c0_i32_1 = arith.constant 0 : i32
    return %arg0, %c0_i32, %c0_i32_0 : i32, i32, i32
  }
  func.func @transform_7(%arg0: i32) -> (i32, i32) {
    %c0_i32 = arith.constant 0 : i32
    %c0_i32_0 = arith.constant 0 : i32
    %c0_i32_1 = arith.constant 0 : i32
    return %c0_i32, %c0_i32_0 : i32, i32
  }
  func.func @transform_8(%arg0: i32) -> (i32, i32) {
    %c0_i32 = arith.constant 0 : i32
    %c0_i32_0 = arith.constant 0 : i32
    %c0_i32_1 = arith.constant 0 : i32
    return %c0_i32, %c0_i32_0 : i32, i32
  }
  func.func @transform_9(%arg0: i32) -> (i32, i32) {
    %c0_i32 = arith.constant 0 : i32
    %c0_i32_0 = arith.constant 0 : i32
    %c0_i32_1 = arith.constant 0 : i32
    return %c0_i32, %c0_i32_0 : i32, i32
  }
  func.func @transform_10(%arg0: i32) -> (i32, i32) {
    %c0_i32 = arith.constant 0 : i32
    %c0_i32_0 = arith.constant 0 : i32
    %c0_i32_1 = arith.constant 0 : i32
    return %c0_i32, %c0_i32_0 : i32, i32
  }
  func.func @transform_11(%arg0: i32) -> (i32, i32) {
    %c0_i32 = arith.constant 0 : i32
    %c0_i32_0 = arith.constant 0 : i32
    %c0_i32_1 = arith.constant 0 : i32
    return %c0_i32, %c0_i32_0 : i32, i32
  }
  func.func @transform_12(%arg0: i32) -> (i32, i32) {
    %c0_i32 = arith.constant 0 : i32
    %c0_i32_0 = arith.constant 0 : i32
    %c0_i32_1 = arith.constant 0 : i32
    return %c0_i32, %c0_i32_0 : i32, i32
  }
  func.func @transform_13(%arg0: i32) -> (i32, i32) {
    %c0_i32 = arith.constant 0 : i32
    %c0_i32_0 = arith.constant 0 : i32
    %c0_i32_1 = arith.constant 0 : i32
    return %c0_i32, %c0_i32_0 : i32, i32
  }
  func.func @transform_14(%arg0: i32) -> (i32, i32) {
    %c0_i32 = arith.constant 0 : i32
    %c0_i32_0 = arith.constant 0 : i32
    %c0_i32_1 = arith.constant 0 : i32
    return %c0_i32, %c0_i32_0 : i32, i32
  }
  func.func @transform_15(%arg0: i32) -> (i32, i32) {
    %c0_i32 = arith.constant 0 : i32
    %c0_i32_0 = arith.constant 0 : i32
    %c0_i32_1 = arith.constant 0 : i32
    return %c0_i32, %c0_i32_0 : i32, i32
  }
  func.func @transform_16(%arg0: i32) -> (i32, i32) {
    %c0_i32 = arith.constant 0 : i32
    %c0_i32_0 = arith.constant 0 : i32
    %c0_i32_1 = arith.constant 0 : i32
    return %c0_i32, %c0_i32_0 : i32, i32
  }
  func.func @transform_17(%arg0: i32) -> (i32, i32) {
    %c0_i32 = arith.constant 0 : i32
    %c0_i32_0 = arith.constant 0 : i32
    %c0_i32_1 = arith.constant 0 : i32
    return %c0_i32, %c0_i32_0 : i32, i32
  }
  func.func @transform_18(%arg0: i32) -> (i32, i32) {
    %c0_i32 = arith.constant 0 : i32
    %c0_i32_0 = arith.constant 0 : i32
    %c0_i32_1 = arith.constant 0 : i32
    return %c0_i32, %c0_i32_0 : i32, i32
  }
  func.func @transform_19(%arg0: i32) -> (i32, i32) {
    %c0_i32 = arith.constant 0 : i32
    %c0_i32_0 = arith.constant 0 : i32
    %c0_i32_1 = arith.constant 0 : i32
    return %c0_i32, %c0_i32_0 : i32, i32
  }
  func.func @transform_20(%arg0: i32) -> (i32, i32) {
    %c0_i32 = arith.constant 0 : i32
    %c0_i32_0 = arith.constant 0 : i32
    %c0_i32_1 = arith.constant 0 : i32
    return %c0_i32, %c0_i32_0 : i32, i32
  }
  func.func @transform_21(%arg0: i32) -> (i32, i32) {
    %c0_i32 = arith.constant 0 : i32
    %c0_i32_0 = arith.constant 0 : i32
    %c0_i32_1 = arith.constant 0 : i32
    return %c0_i32, %c0_i32_0 : i32, i32
  }
  func.func @transform_22(%arg0: i32) -> (i32, i32) {
    %c0_i32 = arith.constant 0 : i32
    %c0_i32_0 = arith.constant 0 : i32
    %c0_i32_1 = arith.constant 0 : i32
    return %c0_i32, %c0_i32_0 : i32, i32
  }
  func.func @transform_23(%arg0: i32) -> (i32, i32) {
    %c0_i32 = arith.constant 0 : i32
    %c0_i32_0 = arith.constant 0 : i32
    %c0_i32_1 = arith.constant 0 : i32
    return %c0_i32, %c0_i32_0 : i32, i32
  }
  func.func @transform_24(%arg0: i32) -> (i32, i32) {
    %c0_i32 = arith.constant 0 : i32
    %c0_i32_0 = arith.constant 0 : i32
    %c0_i32_1 = arith.constant 0 : i32
    return %c0_i32, %c0_i32_0 : i32, i32
  }
  func.func @transform_25(%arg0: i32) -> (i32, i32) {
    %c0_i32 = arith.constant 0 : i32
    %c0_i32_0 = arith.constant 0 : i32
    %c0_i32_1 = arith.constant 0 : i32
    return %c0_i32, %c0_i32_0 : i32, i32
  }
}

</mosaic_0001>

<bundles_post_ra>
// kernel: tpu_custom_call.1
= control target key start
LH: loop header
LB: loop body
LE: loop exit
PB: predicated region body
PF: predicated region fallthrough
CT: control target
= control target key end

     0   :  { %s2448_s0 = inlined_call_operand.vmem [shape: f32[8,8], index: 0, kind: input, shape index: {}]   ;;  %s2449_s1 = inlined_call_operand.vmem [shape: f32[8,1], index: 1, kind: input, shape index: {}]   ;;  %s2450_s2 = inlined_call_operand.vmem [shape: f32[64,3], index: 2, kind: input, shape index: {}]   ;;  %s2451_s3 = inlined_call_operand.vmem [shape: f32[64,1], index: 3, kind: input, shape index: {}]   ;;  %s2452_s4 = inlined_call_operand.vmem [shape: s32[64,1], index: 4, kind: input, shape index: {}]   ;;  %s2453_s5 = inlined_call_operand.vmem [shape: s32[64,1], index: 5, kind: input, shape index: {}]   ;;  %s2454_s6 = inlined_call_operand.vmem [shape: s32[2,1,32], index: 6, kind: input, shape index: {}]   ;;  %s2455_s7 = inlined_call_operand.vmem [shape: f32[8,32], index: 7, kind: input, shape index: {}]   ;;  %s2456_s8 = inlined_call_operand.vmem [shape: f32[8,32], index: 8, kind: input, shape index: {}]   ;;  %s2457_s9 = inlined_call_operand.vmem [shape: f32[1,32], index: 9, kind: input, shape index: {}]   ;;  %s2458_s10 = inlined_call_operand.vmem [shape: f32[1,32], index: 10, kind: input, shape index: {}]   ;;  %s2459_s11 = inlined_call_operand.vmem [shape: bf16[32,32], index: 11, kind: input, shape index: {}]   ;;  %s2460_s12 = inlined_call_operand.vmem [shape: f32[1,32], index: 12, kind: input, shape index: {}]   ;;  %s2461_s13 = inlined_call_operand.vmem [shape: f32[8,32], index: 13, kind: input, shape index: {}]   ;;  %s2462_s14 = inlined_call_operand.vmem [shape: f32[32,32], index: 14, kind: input, shape index: {}]   ;;  %s2463_s15 = inlined_call_operand.vmem [shape: f32[1,32], index: 15, kind: input, shape index: {}]   ;;  %s2464_s16 = inlined_call_operand.vmem [shape: f32[32,8], index: 16, kind: input, shape index: {}]   ;;  %s2465_s17 = inlined_call_operand.vmem [shape: f32[1,8], index: 17, kind: input, shape index: {}]   ;;  %s2466_s18 = inlined_call_operand.vmem [shape: bf16[32,32], index: 18, kind: input, shape index: {}]   ;;  %s2467_s19 = inlined_call_operand.vmem [shape: f32[1,32], index: 19, kind: input, shape index: {}]   ;;  %s2468_s20 = inlined_call_operand.vmem [shape: bf16[32,1], index: 20, kind: input, shape index: {}]   ;;  %s2469_s21 = inlined_call_operand.vmem [shape: f32[8,32], index: 21, kind: input, shape index: {}]   ;;  %s2470_s22 = inlined_call_operand.vmem [shape: f32[1,32], index: 22, kind: input, shape index: {}]   ;;  %s2471_s23 = inlined_call_operand.vmem [shape: f32[32,1], index: 23, kind: input, shape index: {}]   ;;  %s2472_s24 = inlined_call_operand.<no memory space> [shape: f32[1,1], index: 24, kind: input, shape index: {}]   ;;  %s2473_s25 = inlined_call_operand.hbm [shape: f32[8,128], index: 25, kind: output, shape index: {}]  }
   0x1   :  { %2477 = sst [smem:[#allocation10_spill]] %s2448_s0  ;;  %v30_v0 = vstv %s2472_s24 }
   0x2   :  { %2478 = sst [smem:[#allocation11_spill]] %s2449_s1  ;;  %31 = vst [vmem:[#allocation5] sm:$0x1] %v30_v0 }
   0x3   :  { %2479 = sst [smem:[#allocation12_spill]] %s2450_s2 }
   0x4   :  { %2480 = sst [smem:[#allocation13_spill]] %s2451_s3 }
   0x5   :  { %2481 = sst [smem:[#allocation14_spill]] %s2452_s4 }
   0x6   :  { %2482 = sst [smem:[#allocation15_spill]] %s2453_s5 }
   0x7   :  { %2483 = sst [smem:[#allocation16_spill]] %s2454_s6 }
   0x8   :  { %2484 = sst [smem:[#allocation17_spill]] %s2455_s7 }
   0x9   :  { %2485 = sst [smem:[#allocation18_spill]] %s2456_s8 }
   0xa   :  { %2486 = sst [smem:[#allocation19_spill]] %s2457_s9 }
   0xb   :  { %2487 = sst [smem:[#allocation20_spill]] %s2463_s15 }
   0xc   :  { %2488 = sst [smem:[#allocation21_spill]] %s2464_s16 }
   0xd   :  { %2489 = sst [smem:[#allocation22_spill]] %s2465_s17 }
   0xe   :  { %2490 = sst [smem:[#allocation23_spill]] %s2470_s22 }
   0xf   :  { %2491 = sst [smem:[#allocation24_spill]] %s2471_s23 }
  0x10   :  { %2492 = sst [smem:[#allocation25_spill]] %s2473_s25 }
  0x11   :  { %32 = vsyncpa [#allocation7], 0  ;;  %s2210_s6 = smov 0  }
  0x12 LB: > { %2493 = sst [smem:[#allocation9_spill]] %s2067_s6  ;;  %s2216_s30 = sadd.s32 4294967295, %s2067_s6   ;;  %s2067_s6 = sphi %s2210_s6, %s38_s6  }
  0x13   : > { %p1847_p0 = scmp.ge.s32.totalorder %s2067_s6, 1  ;;  %p727_p1 = scmp.lt.s32.totalorder %s2067_s6, 3 }
  0x15   : > { %p728_p2 = pnand %p1847_p0, %p727_p1 }
  0x16   : > { %s1848_s24 = sshll.u32 (!%p728_p2), %s2216_s30, 2  ;;  %p832_p3 = scmp.lt.s32.totalorder (!%p728_p2), %s2216_s30, 1 }
  0x17   : > { %731 = sbr.rel (%p728_p2) target bundleno = 1788 (0x6fc), region = 120  ;;  %p809_p4 = scmp.lt.s32.totalorder (!%p728_p2), %s1848_s24, 7 }
  0x18   : > { %s2494_s1 = sld [smem:[#allocation16_spill]] (!%p728_p2)  ;;  %p1856_p5 = scmp.ne.s32.totalorder (!%p728_p2), %s2216_s30, 0 }
  0x19   : > { %s2495_s9 = sld [smem:[#allocation12_spill]] (!%p728_p2) }
  0x1a   : > { %s2496_s2 = sld [smem:[#allocation13_spill]] (!%p728_p2) }
  0x1b   : > { %s2497_s23 = sld [smem:[#allocation14_spill]] (!%p728_p2) }
  0x1c   : > { %s2223_s7 = scalar_select %p832_p3, %s2216_s30, 1 }
  0x1d   : > { %s2514_s24 = smov (!%p809_p4, %s1848_s24), 7  ;;  %s2498_s3 = sld [smem:[#allocation15_spill]] }
  0x1e   : > { %s834_s8 = scalar_lea.vmem %s2494_s1, %s2223_s7  ;;  %s1849_s27 = sshll.u32 %s2514_s24, 3 }
  0x1f   : > { %s2232_s5 = scalar_lea.vmem %s2495_s9, %s1849_s27  ;;  %839 = sbr.rel (%p1856_p5) target bundleno = 171 (0xab), region = 124 }
  0x20   : > { %s2237_s6 = scalar_lea.vmem %s2496_s2, %s1849_s27  ;;  %s2499_s4 = sld [smem:[#allocation17_spill]] (!%p1856_p5) }
  0x21   : > { %s2242_s22 = scalar_lea.vmem %s2497_s23, %s1849_s27  ;;  %s2500_s0 = sld [smem:[#allocation18_spill]] (!%p1856_p5) }
  0x22   : > { %s2501_s23 = sld [smem:[#allocation10_spill]] (!%p1856_p5) }
  0x23   : > { %s2247_s26 = scalar_lea.vmem %s2498_s3, %s1849_s27 }
  0x24   : > { %vm843_vm0 = vcmask 64512   ;;  %v2069_v4 = vmov 0.0   ;;  %vm868_vm1 = vcmask 257024  }
  0x25   : > { %840 = vst [vmem:[#allocation4] sm:$0xff] %v2069_v4 }
  0x26   : > { %v842_v1 = vld [vmem:[%s2499_s4] sm:$0xff] }
  0x27   : > { %v870_v2 = vld [vmem:[%s2500_s0] sm:$0xff]  ;;  %862 = vmatpush.msra.mxu0 %v842_v1 }
  0x28   : > { %v841_v3 = vld [vmem:[%s2501_s23] sm:$0xff]  ;;  %886 = vmatpush.msra.mxu1 %v870_v2 }
  0x29   : > { %1857 = vmatmul.msk.f32.vlgmr.msra.gmra.mxu0 %vm843_vm0, %v841_v3  ;;  %1858 = vmatmul.msk.f32.vlgmr.msra.gmra.mxu1 %vm843_vm0, %v841_v3 }
  0xa6   : > { %v864_v5 = vpop.f32.mrf.mxu0  ;;  %v888_v6 = vpop.f32.mrf.mxu1 }
  0xa7   : > { %v867_v7 = vpack.c.bf16 %v864_v5, %v864_v5  ;;  %v891_v8 = vpack.c.bf16 %v888_v6, %v888_v6 }
  0xa9   : > { %869 = vst.msk [vmem:[#allocation2] sm:$0xf] %vm868_vm1, %v867_v7 }
  0xaa   : > { %892 = vst.msk [vmem:[#allocation3] sm:$0xf] %vm868_vm1, %v891_v8 }
  0xab PF: > { %v897_v9 = vld [vmem:[%s2247_s26] sm:$0xff]  ;;  %v2070_v11 = vmov 0   ;;  %v899_v12 = vld [vmem:[%s2247_s26 + $0x10] sm:$0xff]  ;;  %v898_v13 = vld [vmem:[%s2247_s26 + $0x8] sm:$0xff]  ;;  %vm972_vm2 = vcmask 1043456   ;;  %v902_v25 = vlaneseq  ;;  %v2071_v29 = vmov 0.0  }
  0xac   : > { %v893_v10 = vld [vmem:[%s2242_s22] sm:$0xff]  ;;  %1961 = vset.pattern.permute.xlu1 %v2070_v11  ;;  %1960 = vset.pattern.permute.xlu0 %v2070_v11  ;;  %v894_v14 = vld [vmem:[%s2242_s22 + $0x8] sm:$0xff]  ;;  %v900_v15 = vld [vmem:[%s2247_s26 + $0x18] sm:$0xff]  ;;  %vm965_vm5 = vcmask 64512   ;;  %p1919_p6 = scmp.ne.s32.totalorder %s2216_s30, 1 }
  0xad   : > { %931 = vperm.xlu1 %1961, %v897_v9   ;;  %905 = vperm.xlu0 %1960, %v893_v10   ;;  %v896_v16 = vld [vmem:[%s2242_s22 + $0x18] sm:$0xff]  ;;  %v895_v17 = vld [vmem:[%s2242_s22 + $0x10] sm:$0xff]  ;;  %v995_v18 = vld [vmem:[%s2237_s6] sm:$0xff]  ;;  %v903_v28 = vand.u32 127, %v902_v25  ;;  %s2502_s22 = sld [smem:[#allocation19_spill]]  ;;  %s2075_s24 = smov (!%p1919_p6), 4  }
  0xae   : > { %1962 = vset.pattern.permute.xlu2 %v2070_v11  ;;  %v997_v19 = vld [vmem:[%s2237_s6 + $0x10] sm:$0xff]  ;;  %v996_v20 = vld [vmem:[%s2237_s6 + $0x8] sm:$0xff]  ;;  %v998_v21 = vld [vmem:[%s2237_s6 + $0x18] sm:$0xff]  ;;  %s2504_s0 = sld [smem:[#allocation10_spill]] (!%p1919_p6) }
  0xaf   : > { %937 = vperm.xlu2 %1962, %v899_v12   ;;  %v1964_v55 = vld [vmem:[%s2458_s10] ss:$0 sm:$0xff]  ;;  %v1932_v59 = vld [vmem:[%s2459_s11 + $0x8] sm:$0xff]  ;;  %s2506_s27 = sld [smem:[#allocation21_spill]] (!%p1919_p6) }
  0xb0   : > { %v963_v24 = vld [vmem:[#allocation2] sm:$0xf]  ;;  %s2507_s28 = sld [smem:[#allocation20_spill]] (!%p1919_p6) }
  0xb1   : > { %v964_v22 = vld [vmem:[#allocation3] sm:$0xf]  ;;  %v1006_v26 = vsel %vm972_vm2, %v963_v24, 0  ;;  %s2508_s29 = sld [smem:[#allocation23_spill]] (!%p1919_p6) }
  0xb2   : > { %v974_v23 = vsel %vm972_vm2, %v964_v22, 0  ;;  %1015 = vmatpush.bf16.msra.mxu1 %v1006_v26  ;;  %v1931_v1 = vld [vmem:[%s2459_s11] sm:$0xff]  ;;  %s2509_s15 = sld [smem:[#allocation24_spill]] (!%p1919_p6) }
  0xb3   : > { %1937 = vmatpush.bf16.msra.mxu2 %v974_v23  ;;  %983 = vmatpush.bf16.msra.mxu0 %v974_v23  ;;  %v1963_v49 = vld [vmem:[%s2502_s22] ss:$0 sm:$0xff]  ;;  %s2510_s26 = sld [smem:[#allocation22_spill]] (!%p1919_p6) }
  0xb5   : > { %934 = vperm.xlu1 %1961, %v898_v13   ;;  %908 = vperm.xlu0 %1960, %v894_v14  }
  0xb7   : > { %940 = vperm.xlu2 %1962, %v900_v15   ;;  %1182 = vmatpush.bf16.msrb.mxu2 %v1932_v59 }
  0xbb   : > { %1183 = vmatpush.bf16.msrb.mxu2 %v1931_v1 }
  0xbd   : > { %914 = vperm.xlu1 %1961, %v896_v16   ;;  %911 = vperm.xlu0 %1960, %v895_v17  }
  0xbf   : > { %1030 = vperm.xlu2 %1962, %v995_v18  }
  0xc5   : > { %1040 = vperm.xlu1 %1961, %v997_v19   ;;  %1035 = vperm.xlu0 %1960, %v996_v20  }
  0xc7   : > { %1045 = vperm.xlu2 %1962, %v998_v21  }
 0x109   : > { %v938_v27 = vpop.permute.xlu2 %937 }
 0x10a   : > { %vm944_vm3 = vcmp.eq.s32.totalorder %v903_v28, %v938_v27 }
 0x10b   : > { %v1865_v30 = vsel %vm944_vm3, 1.0, %v2071_v29 }
 0x111   : > { %v941_v31 = vpop.permute.xlu2 %940 }
 0x112   : > { %vm945_vm4 = vcmp.eq.s32.totalorder %v903_v28, %v941_v31 }
 0x113   : > { %v1866_v32 = vsel %vm945_vm4, 1.0, %v2071_v29  ;;  %vm1169_vm4 = vcmask 261120  }
 0x114   : > { %v955_v33 = vpack.c.bf16 %v1866_v32, %v1865_v30 }
 0x116   : > { %1869 = vmatmul.msk.bf16.vlgmr.msra.gmra.mxu2 %vm965_vm5, %v955_v33 }
 0x119   : > { %v1031_v50 = vpop.permute.xlu2 %1030 }
 0x11a   : > { %v1051_v53 = vmul.f32 %v1963_v49, %v1031_v50 }
 0x11f   : > { %v932_v34 = vpop.permute.xlu1 %931  ;;  %v906_v35 = vpop.permute.xlu0 %905 }
 0x120   : > { %vm942_vm6 = vcmp.eq.s32.totalorder %v903_v28, %v932_v34  ;;  %vm916_vm7 = vcmp.eq.s32.totalorder %v903_v28, %v906_v35 }
 0x121   : > { %v1863_v38 = vsel %vm942_vm6, 1.0, %v2071_v29  ;;  %v1859_v39 = vsel %vm916_vm7, 1.0, %v2071_v29  ;;  %v1046_v14 = vpop.permute.xlu2 %1045 }
 0x122   : > { %v1054_v21 = vmul.f32 %v1963_v49, %v1046_v14  ;;  %v1965_v14 = vld [vmem:[%s2460_s12] ss:$0 sm:$0xff] }
 0x127   : > { %v935_v36 = vpop.permute.xlu1 %934  ;;  %v909_v37 = vpop.permute.xlu0 %908 }
 0x128   : > { %vm943_vm8 = vcmp.eq.s32.totalorder %v903_v28, %v935_v36  ;;  %vm917_vm9 = vcmp.eq.s32.totalorder %v903_v28, %v909_v37 }
 0x129   : > { %v1864_v40 = vsel %vm943_vm8, 1.0, %v2071_v29  ;;  %v1860_v41 = vsel %vm917_vm9, 1.0, %v2071_v29 }
 0x12a   : > { %v954_v42 = vpack.c.bf16 %v1864_v40, %v1863_v38  ;;  %v928_v43 = vpack.c.bf16 %v1860_v41, %v1859_v39 }
 0x12c   : > { %1868 = vmatmul.msk.bf16.vlgmr.msra.gmra.mxu0 %vm965_vm5, %v954_v42  ;;  %1870 = vmatmul.msk.bf16.vlgmr.msra.gmra.mxu1 %vm965_vm5, %v928_v43 }
 0x12f   : > { %v915_v44 = vpop.permute.xlu1 %914  ;;  %v912_v45 = vpop.permute.xlu0 %911 }
 0x130   : > { %vm919_vm10 = vcmp.eq.s32.totalorder %v903_v28, %v915_v44  ;;  %vm918_vm11 = vcmp.eq.s32.totalorder %v903_v28, %v912_v45 }
 0x131   : > { %v1862_v46 = vsel %vm919_vm10, 1.0, %v2071_v29  ;;  %v1861_v47 = vsel %vm918_vm11, 1.0, %v2071_v29 }
 0x132   : > { %v929_v48 = vpack.c.bf16 %v1862_v46, %v1861_v47 }
 0x137   : > { %v1036_v58 = vpop.permute.xlu0 %1035  ;;  %v1041_v4 = vpop.permute.xlu1 %1040 }
 0x138   : > { %v1052_v63 = vmul.f32 %v1963_v49, %v1036_v58  ;;  %v1053_v10 = vmul.f32 %v1963_v49, %v1041_v4 }
 0x13c   : > { %1871 = vmatmul.msk.bf16.gmra.mxu1 %vm965_vm5, %v929_v48 }
 0x199   : > { %v990_v5 = vpop.f32.mrf.mxu2 }
 0x1a1   : > { %v992_v18 = vpop.f32.mrf.mxu2 }
 0x1a9   : > { %v985_v51 = vpop.f32.mrf.mxu0  ;;  %v1017_v52 = vpop.f32.mrf.mxu1 }
 0x1aa   : > { %v1018_v54 = vadd.f32 %v1017_v52, %v985_v51 }
 0x1ac   : > { %v1055_v56 = vadd.f32 %v1051_v53, %v1018_v54 }
 0x1ae   : > { %v2290_v57 = vadd.f32 %v1964_v55, %v1055_v56 }
 0x1b0   : > { %v1872_v60 = vmul.f32 -1.442695, %v2290_v57 }
 0x1b1   : > { %v987_v61 = vpop.f32.mrf.mxu0  ;;  %v1019_v62 = vpop.f32.mrf.mxu1 }
 0x1b2   : > { %1968 = vpow2.f32 %v1872_v60  ;;  %v1020_v0 = vadd.f32 %v1019_v62, %v987_v61 }
 0x1b4   : > { %v1056_v2 = vadd.f32 %v1052_v63, %v1020_v0 }
 0x1b6   : > { %v2299_v3 = vadd.f32 %v1964_v55, %v1056_v2 }
 0x1b8   : > { %v1969_v6 = vpop.eup %1968  ;;  %v1873_v7 = vmul.f32 -1.442695, %v2299_v3 }
 0x1b9   : > { %v1079_v8 = vadd.f32 1.0, %v1969_v6  ;;  %v1022_v9 = vpop.f32.mrf.mxu1 }
 0x1ba   : > { %1970 = vpow2.f32 %v1873_v7  ;;  %v1023_v11 = vadd.f32 %v1022_v9, %v990_v5 }
 0x1bb   : > { %1972 = vrcp.f32 %v1079_v8  ;;  %v1094_v36 = vand.u32 2147483648, %v1079_v8  ;;  %vm1088_vm13 = vweird.f32 %v1079_v8  ;;  %v1092_v37 = vand.u32 2147483647, %v1079_v8 }
 0x1bc   : > { %v1057_v12 = vadd.f32 %v1053_v10, %v1023_v11 }
 0x1bd   : > { %v1095_v43 = vor.u32 1.1754944e-38, %v1094_v36  ;;  %vm1093_vm0 = vcmp.eq.f32.partialorder %v1092_v37, 8.507059e+37 }
 0x1be   : > { %v2302_v13 = vadd.f32 %v1964_v55, %v1057_v12 }
 0x1c0   : > { %v1971_v15 = vpop.eup %1970  ;;  %v1874_v16 = vmul.f32 -1.442695, %v2302_v13 }
 0x1c1   : > { %v1973_v17 = vpop.eup %1972  ;;  %v1080_v19 = vadd.f32 1.0, %v1971_v15  ;;  %v1024_v20 = vpop.f32.mrf.mxu1 }
 0x1c2   : > { %v1084_v22 = vmul.f32 %v1973_v17, %v1079_v8  ;;  %1974 = vpow2.f32 %v1874_v16  ;;  %v1025_v23 = vadd.f32 %v1024_v20, %v992_v18  ;;  %vm1089_vm12 = vweird.f32 %v1973_v17  ;;  %v1934_v18 = vld [vmem:[%s2466_s18 + $0x8] sm:$0xff] }
 0x1c3   : > { %1976 = vrcp.f32 %v1080_v19  ;;  %vm1090_vm14 = vmor %vm1088_vm13, %vm1089_vm12  ;;  %v1109_v39 = vand.u32 2147483648, %v1080_v19  ;;  %v1107_v42 = vand.u32 2147483647, %v1080_v19  ;;  %vm1103_vm1 = vweird.f32 %v1080_v19  ;;  %1321 = vmatpush.bf16.msra.mxu3 %v1934_v18 }
 0x1c4   : > { %v1085_v24 = vsub.f32 1.0, %v1084_v22  ;;  %v1058_v26 = vadd.f32 %v1054_v21, %v1025_v23  ;;  %v1933_v22 = vld [vmem:[%s2466_s18] sm:$0xff] }
 0x1c5   : > { %v1110_v48 = vor.u32 1.1754944e-38, %v1109_v39  ;;  %vm1108_vm3 = vcmp.eq.f32.partialorder %v1107_v42, 8.507059e+37 }
 0x1c6   : > { %v1086_v27 = vmul.f32 %v1973_v17, %v1085_v24  ;;  %v2305_v28 = vadd.f32 %v1964_v55, %v1058_v26 }
 0x1c7   : > { %1322 = vmatpush.bf16.msra.mxu3 %v1933_v22 }
 0x1c8   : > { %v1975_v30 = vpop.eup %1974  ;;  %v1875_v31 = vmul.f32 -1.442695, %v2305_v28  ;;  %v1087_v34 = vadd.f32 %v1973_v17, %v1086_v27 }
 0x1c9   : > { %v1977_v32 = vpop.eup %1976  ;;  %v1081_v33 = vadd.f32 1.0, %v1975_v30 }
 0x1ca   : > { %v1099_v35 = vmul.f32 %v1977_v32, %v1080_v19  ;;  %1978 = vpow2.f32 %v1875_v31  ;;  %v1091_v40 = vsel %vm1090_vm14, %v1973_v17, %v1087_v34  ;;  %vm1104_vm15 = vweird.f32 %v1977_v32 }
 0x1cb   : > { %1980 = vrcp.f32 %v1081_v33  ;;  %v1096_v47 = vsel %vm1093_vm0, %v1095_v43, %v1091_v40  ;;  %vm1105_vm2 = vmor %vm1103_vm1, %vm1104_vm15  ;;  %v1124_v62 = vand.u32 2147483648, %v1081_v33  ;;  %vm1118_vm7 = vweird.f32 %v1081_v33 }
 0x1cc   : > { %v1100_v38 = vsub.f32 1.0, %v1099_v35  ;;  %v1143_v53 = vmul.f32 %v1096_v47, %v2290_v57  ;;  %v1122_v63 = vand.u32 2147483647, %v1081_v33 }
 0x1cd   : > { %v1125_v4 = vor.u32 1.1754944e-38, %v1124_v62 }
 0x1ce   : > { %v1101_v41 = vmul.f32 %v1977_v32, %v1100_v38  ;;  %vm1123_vm10 = vcmp.eq.f32.partialorder %v1122_v63, 8.507059e+37 }
 0x1d0   : > { %v1979_v44 = vpop.eup %1978  ;;  %v1102_v45 = vadd.f32 %v1977_v32, %v1101_v41 }
 0x1d1   : > { %v1981_v46 = vpop.eup %1980  ;;  %v1082_v49 = vadd.f32 1.0, %v1979_v44 }
 0x1d2   : > { %v1106_v50 = vsel %vm1105_vm2, %v1977_v32, %v1102_v45  ;;  %v1114_v51 = vmul.f32 %v1981_v46, %v1081_v33  ;;  %vm1119_vm6 = vweird.f32 %v1981_v46 }
 0x1d3   : > { %v1111_v52 = vsel %vm1108_vm3, %v1110_v48, %v1106_v50  ;;  %1982 = vrcp.f32 %v1082_v49  ;;  %vm1120_vm8 = vmor %vm1118_vm7, %vm1119_vm6  ;;  %v1139_v1 = vand.u32 2147483648, %v1082_v49  ;;  %vm1133_vm11 = vweird.f32 %v1082_v49 }
 0x1d4   : > { %v1144_v54 = vmul.f32 %v1111_v52, %v2299_v3  ;;  %v1115_v55 = vsub.f32 1.0, %v1114_v51  ;;  %v1137_v3 = vand.u32 2147483647, %v1082_v49 }
 0x1d5   : > { %v1140_v7 = vor.u32 1.1754944e-38, %v1139_v1 }
 0x1d6   : > { %v1147_v56 = vpack.c.bf16 %v1144_v54, %v1143_v53  ;;  %v1116_v58 = vmul.f32 %v1981_v46, %v1115_v55  ;;  %vm1138_vm13 = vcmp.eq.f32.partialorder %v1137_v3, 8.507059e+37 }
 0x1d8   : > { %1884 = vmatmul.msk.bf16.vlgmr.msrb.gmra.mxu2 %vm1169_vm4, %v1147_v56  ;;  %v1117_v60 = vadd.f32 %v1981_v46, %v1116_v58 }
 0x1d9   : > { %v1983_v59 = vpop.eup %1982 }
 0x1da   : > { %v1129_v61 = vmul.f32 %v1983_v59, %v1082_v49  ;;  %v1121_v2 = vsel %vm1120_vm8, %v1981_v46, %v1117_v60  ;;  %vm1134_vm9 = vweird.f32 %v1983_v59 }
 0x1db   : > { %v1126_v6 = vsel %vm1123_vm10, %v1125_v4, %v1121_v2  ;;  %vm1135_vm12 = vmor %vm1133_vm11, %vm1134_vm9 }
 0x1dc   : > { %v1130_v0 = vsub.f32 1.0, %v1129_v61  ;;  %v1145_v10 = vmul.f32 %v1126_v6, %v2302_v13 }
 0x1de   : > { %v1131_v57 = vmul.f32 %v1983_v59, %v1130_v0 }
 0x1e0   : > { %v1132_v5 = vadd.f32 %v1983_v59, %v1131_v57 }
 0x1e2   : > { %v1136_v8 = vsel %vm1135_vm12, %v1983_v59, %v1132_v5 }
 0x1e3   : > { %v1141_v9 = vsel %vm1138_vm13, %v1140_v7, %v1136_v8 }
 0x1e4   : > { %v1146_v11 = vmul.f32 %v1141_v9, %v2305_v28 }
 0x1e6   : > { %v1148_v12 = vpack.c.bf16 %v1146_v11, %v1145_v10 }
 0x1e8   : > { %1885 = vmatmul.msk.bf16.gmra.mxu2 %vm1169_vm4, %v1148_v12 }
 0x25b   : > { %v1185_v15 = vpop.f32.mrf.mxu2 }
 0x25c   : > { %v1186_v16 = vadd.f32 %v1965_v14, %v1185_v15 }
 0x25e   : > { %v1886_v17 = vmul.f32 -1.442695, %v1186_v16 }
 0x260   : > { %1984 = vpow2.f32 %v1886_v17 }
 0x263   : > { %v1187_v19 = vpop.f32.mrf.mxu2 }
 0x264   : > { %v1188_v20 = vadd.f32 %v1965_v14, %v1187_v19 }
 0x266   : > { %v1985_v13 = vpop.eup %1984  ;;  %v1887_v21 = vmul.f32 -1.442695, %v1188_v20 }
 0x267   : > { %v1207_v23 = vadd.f32 1.0, %v1985_v13 }
 0x268   : > { %1986 = vpow2.f32 %v1887_v21 }
 0x269   : > { %1988 = vrcp.f32 %v1207_v23  ;;  %v1222_v37 = vand.u32 2147483648, %v1207_v23  ;;  %vm1216_vm15 = vweird.f32 %v1207_v23  ;;  %v1220_v40 = vand.u32 2147483647, %v1207_v23 }
 0x26b   : > { %v1190_v24 = vpop.f32.mrf.mxu2  ;;  %v1223_v46 = vor.u32 1.1754944e-38, %v1222_v37  ;;  %vm1221_vm1 = vcmp.eq.f32.partialorder %v1220_v40, 8.507059e+37 }
 0x26c   : > { %v2323_v26 = vadd.f32 %v1965_v14, %v1190_v24 }
 0x26e   : > { %v1987_v27 = vpop.eup %1986  ;;  %v1888_v28 = vmul.f32 -1.442695, %v2323_v26 }
 0x26f   : > { %v1989_v30 = vpop.eup %1988  ;;  %v1208_v31 = vadd.f32 1.0, %v1987_v27 }
 0x270   : > { %v1212_v32 = vmul.f32 %v1989_v30, %v1207_v23  ;;  %1990 = vpow2.f32 %v1888_v28  ;;  %vm1217_vm14 = vweird.f32 %v1989_v30 }
 0x271   : > { %1992 = vrcp.f32 %v1208_v31  ;;  %vm1218_vm0 = vmor %vm1216_vm15, %vm1217_vm14  ;;  %v1237_v49 = vand.u32 2147483648, %v1208_v31  ;;  %v1235_v51 = vand.u32 2147483647, %v1208_v31  ;;  %vm1231_vm3 = vweird.f32 %v1208_v31 }
 0x272   : > { %v1213_v33 = vsub.f32 1.0, %v1212_v32 }
 0x273   : > { %v1192_v34 = vpop.f32.mrf.mxu2  ;;  %v1238_v56 = vor.u32 1.1754944e-38, %v1237_v49  ;;  %vm1236_vm7 = vcmp.eq.f32.partialorder %v1235_v51, 8.507059e+37 }
 0x274   : > { %v1214_v35 = vmul.f32 %v1989_v30, %v1213_v33  ;;  %v2326_v36 = vadd.f32 %v1965_v14, %v1192_v34  ;;  %v1936_v34 = vld [vmem:[%s2468_s20 + $0x8] sm:$0xff] }
 0x275   : > { %1444 = vmatpush.bf16.msrb.mxu0 %v1936_v34 }
 0x276   : > { %v1991_v38 = vpop.eup %1990  ;;  %v1215_v39 = vadd.f32 %v1989_v30, %v1214_v35  ;;  %v1889_v41 = vmul.f32 -1.442695, %v2326_v36  ;;  %v1935_v35 = vld [vmem:[%s2468_s20] sm:$0xff] }
 0x277   : > { %v1993_v42 = vpop.eup %1992  ;;  %v1209_v43 = vadd.f32 1.0, %v1991_v38 }
 0x278   : > { %v1219_v44 = vsel %vm1218_vm0, %v1989_v30, %v1215_v39  ;;  %v1227_v45 = vmul.f32 %v1993_v42, %v1208_v31  ;;  %1994 = vpow2.f32 %v1889_v41  ;;  %vm1232_vm2 = vweird.f32 %v1993_v42 }
 0x279   : > { %1996 = vrcp.f32 %v1209_v43  ;;  %v1224_v48 = vsel %vm1221_vm1, %v1223_v46, %v1219_v44  ;;  %vm1233_vm6 = vmor %vm1231_vm3, %vm1232_vm2  ;;  %vm1246_vm9 = vweird.f32 %v1209_v43  ;;  %v1252_v57 = vand.u32 2147483648, %v1209_v43  ;;  %1445 = vmatpush.bf16.msrb.mxu0 %v1935_v35 }
 0x27a   : > { %v1228_v47 = vsub.f32 1.0, %v1227_v45  ;;  %v1271_v53 = vmul.f32 %v1224_v48, %v1186_v16  ;;  %v1250_v6 = vand.u32 2147483647, %v1209_v43 }
 0x27b   : > { %v1253_v11 = vor.u32 1.1754944e-38, %v1252_v57 }
 0x27c   : > { %v1229_v50 = vmul.f32 %v1993_v42, %v1228_v47  ;;  %v1275_v62 = vpack.c.bf16 %v1271_v53, %v1271_v53  ;;  %vm1251_vm11 = vcmp.eq.f32.partialorder %v1250_v6, 8.507059e+37 }
 0x27e   : > { %v1995_v52 = vpop.eup %1994  ;;  %v1230_v54 = vadd.f32 %v1993_v42, %v1229_v50  ;;  %v1291_v3 = vunpack.c.l.b16 %v1275_v62 }
 0x27f   : > { %v1997_v55 = vpop.eup %1996  ;;  %v1210_v58 = vadd.f32 1.0, %v1995_v52 }
 0x280   : > { %v1234_v59 = vsel %vm1233_vm6, %v1993_v42, %v1230_v54  ;;  %v1242_v60 = vmul.f32 %v1997_v55, %v1209_v43  ;;  %vm1247_vm8 = vweird.f32 %v1997_v55 }
 0x281   : > { %v1239_v61 = vsel %vm1236_vm7, %v1238_v56, %v1234_v59  ;;  %1998 = vrcp.f32 %v1210_v58  ;;  %vm1248_vm10 = vmor %vm1246_vm9, %vm1247_vm8  ;;  %v1267_v15 = vand.u32 2147483648, %v1210_v58  ;;  %v1265_v17 = vand.u32 2147483647, %v1210_v58 }
 0x282   : > { %v1272_v63 = vmul.f32 %v1239_v61, %v1188_v20  ;;  %v1243_v0 = vsub.f32 1.0, %v1242_v60  ;;  %vm1261_vm13 = vweird.f32 %v1210_v58 }
 0x283   : > { %v1268_v20 = vor.u32 1.1754944e-38, %v1267_v15  ;;  %vm1266_vm15 = vcmp.eq.f32.partialorder %v1265_v17, 8.507059e+37 }
 0x284   : > { %v1276_v1 = vpack.c.bf16 %v1272_v63, %v1272_v63  ;;  %v1244_v2 = vmul.f32 %v1997_v55, %v1243_v0 }
 0x286   : > { %v1292_v4 = vunpack.c.l.b16 %v1276_v1  ;;  %v1245_v5 = vadd.f32 %v1997_v55, %v1244_v2 }
 0x287   : > { %v1999_v7 = vpop.eup %1998 }
 0x288   : > { %v1249_v8 = vsel %vm1248_vm10, %v1997_v55, %v1245_v5  ;;  %v1257_v9 = vmul.f32 %v1999_v7, %v1210_v58  ;;  %v2329_v10 = vpack.c.b16 %v1292_v4, %v1291_v3  ;;  %vm1262_vm12 = vweird.f32 %v1999_v7 }
 0x289   : > { %v1254_v14 = vsel %vm1251_vm11, %v1253_v11, %v1249_v8  ;;  %vm1263_vm14 = vmor %vm1261_vm13, %vm1262_vm12 }
 0x28a   : > { %v1258_v12 = vsub.f32 1.0, %v1257_v9  ;;  %1898 = vmatmul.msk.bf16.vlgmr.msra.gmra.mxu3 %vm1169_vm4, %v2329_v10  ;;  %v1273_v18 = vmul.f32 %v1254_v14, %v2323_v26  ;;  %v1966_v26 = vld [vmem:[%s2467_s19] ss:$0 sm:$0xff] }
 0x28c   : > { %v1259_v16 = vmul.f32 %v1999_v7, %v1258_v12  ;;  %v1277_v22 = vpack.c.bf16 %v1273_v18, %v1273_v18 }
 0x28e   : > { %v1260_v19 = vadd.f32 %v1999_v7, %v1259_v16  ;;  %v1293_v27 = vunpack.c.l.b16 %v1277_v22 }
 0x290   : > { %v1264_v13 = vsel %vm1263_vm14, %v1999_v7, %v1260_v19 }
 0x291   : > { %v1269_v21 = vsel %vm1266_vm15, %v1268_v20, %v1264_v13 }
 0x292   : > { %v1274_v23 = vmul.f32 %v1269_v21, %v2326_v36 }
 0x294   : > { %v1278_v24 = vpack.c.bf16 %v1274_v23, %v1274_v23 }
 0x296   : > { %v1294_v28 = vunpack.c.l.b16 %v1278_v24 }
 0x298   : > { %v2335_v30 = vpack.c.b16 %v1294_v28, %v1293_v27 }
 0x29a   : > { %1899 = vmatmul.msk.bf16.gmra.mxu3 %vm1169_vm4, %v2335_v30 }
 0x30d   : > { %v1324_v31 = vpop.f32.mrf.mxu3 }
 0x30e   : > { %v1325_v32 = vadd.f32 %v1966_v26, %v1324_v31 }
 0x310   : > { %v1900_v33 = vmul.f32 -1.442695, %v1325_v32 }
 0x312   : > { %2000 = vpow2.f32 %v1900_v33 }
 0x315   : > { %v1326_v36 = vpop.f32.mrf.mxu3 }
 0x316   : > { %v1327_v37 = vadd.f32 %v1966_v26, %v1326_v36 }
 0x318   : > { %v2001_v38 = vpop.eup %2000  ;;  %v1901_v39 = vmul.f32 -1.442695, %v1327_v37 }
 0x319   : > { %v1346_v40 = vadd.f32 1.0, %v2001_v38 }
 0x31a   : > { %2002 = vpow2.f32 %v1901_v39 }
 0x31b   : > { %2004 = vrcp.f32 %v1346_v40  ;;  %v1361_v59 = vand.u32 2147483648, %v1346_v40  ;;  %vm1355_vm1 = vweird.f32 %v1346_v40  ;;  %v1359_v60 = vand.u32 2147483647, %v1346_v40 }
 0x31d   : > { %v1329_v41 = vpop.f32.mrf.mxu3  ;;  %v1362_v2 = vor.u32 1.1754944e-38, %v1361_v59  ;;  %vm1360_vm6 = vcmp.eq.f32.partialorder %v1359_v60, 8.507059e+37 }
 0x31e   : > { %v2348_v42 = vadd.f32 %v1966_v26, %v1329_v41 }
 0x320   : > { %v2003_v43 = vpop.eup %2002  ;;  %v1902_v44 = vmul.f32 -1.442695, %v2348_v42 }
 0x321   : > { %v2005_v45 = vpop.eup %2004  ;;  %v1347_v46 = vadd.f32 1.0, %v2003_v43 }
 0x322   : > { %v1351_v47 = vmul.f32 %v2005_v45, %v1346_v40  ;;  %2006 = vpow2.f32 %v1902_v44  ;;  %vm1356_vm0 = vweird.f32 %v2005_v45  ;;  %v1457_v44 = vld [vmem:[%s2232_s5] sm:$0xff] }
 0x323   : > { %2008 = vrcp.f32 %v1347_v46  ;;  %vm1357_vm2 = vmor %vm1355_vm1, %vm1356_vm0  ;;  %v1376_v62 = vand.u32 2147483648, %v1347_v46  ;;  %v1374_v1 = vand.u32 2147483647, %v1347_v46  ;;  %vm1370_vm7 = vweird.f32 %v1347_v46 }
 0x324   : > { %v1352_v48 = vsub.f32 1.0, %v1351_v47 }
 0x325   : > { %v1331_v49 = vpop.f32.mrf.mxu3  ;;  %v1377_v6 = vor.u32 1.1754944e-38, %v1376_v62  ;;  %vm1375_vm9 = vcmp.eq.f32.partialorder %v1374_v1, 8.507059e+37 }
 0x326   : > { %v1353_v50 = vmul.f32 %v2005_v45, %v1352_v48  ;;  %v2351_v51 = vadd.f32 %v1966_v26, %v1331_v49  ;;  %v1458_v49 = vld [vmem:[%s2232_s5 + $0x8] sm:$0xff] }
 0x328   : > { %v2007_v52 = vpop.eup %2006  ;;  %v1903_v53 = vmul.f32 -1.442695, %v2351_v51  ;;  %v1354_v56 = vadd.f32 %v2005_v45, %v1353_v50  ;;  %v1460_v50 = vld [vmem:[%s2232_s5 + $0x18] sm:$0xff] }
 0x329   : > { %v2009_v54 = vpop.eup %2008  ;;  %v1348_v55 = vadd.f32 1.0, %v2007_v52 }
 0x32a   : > { %v1366_v58 = vmul.f32 %v2009_v54, %v1347_v46  ;;  %2010 = vpow2.f32 %v1903_v53  ;;  %v1358_v63 = vsel %vm1357_vm2, %v2005_v45, %v1354_v56  ;;  %vm1371_vm3 = vweird.f32 %v2009_v54  ;;  %v1459_v46 = vld [vmem:[%s2232_s5 + $0x10] sm:$0xff]  ;;  %s2072_s5 = smov 32  }
 0x32b   : > { %2012 = vrcp.f32 %v1348_v55  ;;  %v1363_v5 = vsel %vm1360_vm6, %v1362_v2, %v1358_v63  ;;  %vm1372_vm8 = vmor %vm1370_vm7, %vm1371_vm3  ;;  %v1391_v13 = vand.u32 2147483648, %v1348_v55  ;;  %vm1385_vm11 = vweird.f32 %v1348_v55 }
 0x32c   : > { %v1367_v61 = vsub.f32 1.0, %v1366_v58  ;;  %v1410_v12 = vmul.f32 %v1363_v5, %v1325_v32  ;;  %v1389_v21 = vand.u32 2147483647, %v1348_v55  ;;  %v957_v5 = vshrl.u32 %v902_v25, 7 }
 0x32d   : > { %v1392_v26 = vor.u32 1.1754944e-38, %v1391_v13  ;;  %vm1515_vm3 = vcmask 285696  }
 0x32e   : > { %v1368_v0 = vmul.f32 %v2009_v54, %v1367_v61  ;;  %vm1390_vm14 = vcmp.eq.f32.partialorder %v1389_v21, 8.507059e+37 }
 0x330   : > { %v2011_v57 = vpop.eup %2010  ;;  %v1369_v3 = vadd.f32 %v2009_v54, %v1368_v0 }
 0x331   : > { %v2013_v4 = vpop.eup %2012  ;;  %v1349_v7 = vadd.f32 1.0, %v2011_v57 }
 0x332   : > { %v1373_v8 = vsel %vm1372_vm8, %v2009_v54, %v1369_v3  ;;  %v1381_v9 = vmul.f32 %v2013_v4, %v1348_v55  ;;  %vm1386_vm10 = vweird.f32 %v2013_v4 }
 0x333   : > { %v1378_v11 = vsel %vm1375_vm9, %v1377_v6, %v1373_v8  ;;  %2014 = vrcp.f32 %v1349_v7  ;;  %vm1387_vm12 = vmor %vm1385_vm11, %vm1386_vm10  ;;  %v1406_v23 = vand.u32 2147483648, %v1349_v7  ;;  %v1404_v28 = vand.u32 2147483647, %v1349_v7  ;;  %v1967_v6 = vld [vmem:[%s834_s8] ss:$0 sm:$0xff]  ;;  %s2074_s8 = smov (!%p1919_p6), 97  }
 0x334   : > { %v1411_v14 = vmul.f32 %v1378_v11, %v1327_v37  ;;  %v1382_v15 = vsub.f32 1.0, %v1381_v9  ;;  %vm1400_vm15 = vweird.f32 %v1349_v7  ;;  %vm959_vm2 = vcmp.eq.s32.totalorder %v957_v5, %v1967_v6 }
 0x335   : > { %v1407_v33 = vor.u32 1.1754944e-38, %v1406_v23  ;;  %vm1405_vm1 = vcmp.eq.f32.partialorder %v1404_v28, 8.507059e+37 }
 0x336   : > { %v1414_v16 = vpack.c.bf16 %v1411_v14, %v1410_v12  ;;  %v1383_v17 = vmul.f32 %v2013_v4, %v1382_v15  ;;  %v1867_v14 = vsel %vm959_vm2, 1.0, %v2071_v29 }
 0x337   : > { %v962_v15 = vpack.c.bf16 %v1867_v14, %v1867_v14 }
 0x338   : > { %1912 = vmatmul.msk.bf16.vlgmr.msrb.gmra.mxu0 %vm1169_vm4, %v1414_v16  ;;  %v1384_v19 = vadd.f32 %v2013_v4, %v1383_v17  ;;  %v1521_v16 = vld [vmem:[#allocation4] sm:$0xff] }
 0x339   : > { %v2015_v18 = vpop.eup %2014 }
 0x33a   : > { %v1396_v20 = vmul.f32 %v2015_v18, %v1349_v7  ;;  %v1388_v24 = vsel %vm1387_vm12, %v2013_v4, %v1384_v19  ;;  %vm1401_vm13 = vweird.f32 %v2015_v18 }
 0x33b   : > { %v1393_v32 = vsel %vm1390_vm14, %v1392_v26, %v1388_v24  ;;  %vm1402_vm0 = vmor %vm1400_vm15, %vm1401_vm13 }
 0x33c   : > { %v1397_v22 = vsub.f32 1.0, %v1396_v20  ;;  %v1412_v36 = vmul.f32 %v1393_v32, %v2348_v42 }
 0x33e   : > { %v1398_v27 = vmul.f32 %v2015_v18, %v1397_v22 }
 0x340   : > { %v1399_v31 = vadd.f32 %v2015_v18, %v1398_v27 }
 0x342   : > { %v1403_v34 = vsel %vm1402_vm0, %v2015_v18, %v1399_v31 }
 0x343   : > { %v1408_v35 = vsel %vm1405_vm1, %v1407_v33, %v1403_v34 }
 0x344   : > { %v1413_v37 = vmul.f32 %v1408_v35, %v2351_v51 }
 0x346   : > { %v1415_v38 = vpack.c.bf16 %v1413_v37, %v1412_v36 }
 0x348   : > { %1913 = vmatmul.msk.bf16.gmra.mxu0 %vm1169_vm4, %v1415_v38 }
 0x3b5   : > { %v1447_v39 = vpop.f32.mrf.mxu0 }
 0x3b6   : > { %1463 = vperm.xlu2 %1962, %v1447_v39  }
 0x3bd   : > { %v1449_v40 = vpop.f32.mrf.mxu0 }
 0x3c5   : > { %v1452_v41 = vpop.f32.mrf.mxu0 }
 0x3c6   : > { %1473 = vperm.xlu0 %1960, %v1452_v41  }
 0x3cd   : > { %v1454_v43 = vpop.f32.mrf.mxu0 }
 0x3ce   : > { %1468 = vperm.xlu0 %1960, %v1449_v40   ;;  %1478 = vperm.xlu1 %1961, %v1454_v43  }
 0x410   : > { %v1464_v45 = vpop.permute.xlu2 %1463 }
 0x411   : > { %v1481_v42 = vmul.f32 %v1464_v45, %v1457_v44 }
 0x413   : > { %v1914_v51 = vclamps-f32 %v1481_v42, 100.0 }
 0x415   : > { %v1493_v58 = vpack.c.bf16 %v1914_v51, %v1914_v51 }
 0x417   : > { %v1501_v0 = vunpack.c.l.b16 %v1493_v58 }
 0x438   : > { %v1474_v47 = vpop.permute.xlu0 %1473 }
 0x439   : > { %v1483_v48 = vmul.f32 %v1474_v47, %v1459_v46 }
 0x43b   : > { %v1916_v52 = vclamps-f32 %v1483_v48, 100.0 }
 0x43d   : > { %v1495_v59 = vpack.c.bf16 %v1916_v52, %v1916_v52 }
 0x43f   : > { %v1503_v1 = vunpack.c.l.b16 %v1495_v59 }
 0x440   : > { %v1469_v53 = vpop.permute.xlu0 %1468  ;;  %v1479_v54 = vpop.permute.xlu1 %1478 }
 0x441   : > { %v1482_v55 = vmul.f32 %v1469_v53, %v1458_v49  ;;  %v1484_v56 = vmul.f32 %v1479_v54, %v1460_v50 }
 0x443   : > { %v1915_v60 = vclamps-f32 %v1482_v55, 100.0  ;;  %v1917_v61 = vclamps-f32 %v1484_v56, 100.0 }
 0x445   : > { %v1494_v62 = vpack.c.bf16 %v1915_v60, %v1915_v60  ;;  %v1496_v63 = vpack.c.bf16 %v1917_v61, %v1917_v61 }
 0x447   : > { %v1502_v2 = vunpack.c.l.b16 %v1494_v62  ;;  %v1504_v57 = vunpack.c.l.b16 %v1496_v63 }
 0x449   : > { %v1505_v3 = vpack.c.b16 %v1502_v2, %v1501_v0  ;;  %v1506_v4 = vpack.c.b16 %v1504_v57, %v1503_v1 }
 0x44b   : > { %1507 = vrot.lane.b32.xlu2 %v1505_v3, %s2072_s5  ;;  %1509 = vrot.lane.b32.xlu1 %v1506_v4, %s2072_s5  ;;  %s2505_s5 = sld [smem:[#allocation11_spill]] (!%p1919_p6) }
 0x4a5   : > { %v1508_v7 = vpop.permute.xlu2 %1507 }
 0x4a6   : > { %v1512_v12 = vsel %vm1169_vm4, %v2329_v10, %v1508_v7 }
 0x4a7   : > { %v1517_v25 = vsel %vm1515_vm3, %v1512_v12, 0 }
 0x4bd   : > { %v1510_v8 = vpop.permute.xlu1 %1509 }
 0x4be   : > { %v1514_v9 = vsel %vm1169_vm4, %v2335_v30, %v1510_v8 }
 0x4bf   : > { %v1519_v11 = vsel %vm1515_vm3, %v1514_v9, 0 }
 0x4c0   : > { %1531 = vmatpush.bf16.msrb.mxu1 %v1519_v11 }
 0x4c4   : > { %1532 = vmatpush.bf16.msrb.mxu1 %v1517_v25 }
 0x4c7   : > { %1918 = vmatmul.msk.bf16.vlgmr.msrb.gmra.mxu1 %vm1169_vm4, %v962_v15 }
 0x544   : > { %v1534_v17 = vpop.f32.mrf.mxu1 }
 0x545   : > { %v1538_v18 = vadd.f32 %v1534_v17, %v1521_v16 }
 0x547   : > { %1539 = vst [vmem:[#allocation4] sm:$0xff] %v1538_v18 }
 0x548   : > { %1543 = sbr.rel (%p1919_p6) target bundleno = 1777 (0x6f1), region = 128 }
 0x54c   : > { %v1536_v19 = vpop.f32.mrf.mxu1 }
 0x54d   : > { %v1636_v30 = vld [vmem:[%s2462_s14 + $0x18] sm:$0xff]  ;;  %v1635_v29 = vld [vmem:[%s2462_s14 + $0x10] sm:$0xff]  ;;  %v1634_v10 = vld [vmem:[%s2462_s14 + $0x8] sm:$0xff]  ;;  %v2073_v24 = vmov 0   ;;  %vm1744_vm13 = vcmask 7168   ;;  %vm1746_vm14 = vcmask 31744  }
 0x54e   : > { %1652 = vmatpush.msra.mxu2 %v1636_v30  ;;  %v1632_v20 = vld [vmem:[%s2461_s13] sm:$0xff]  ;;  %v2397_v23 = vld [vmem:[#allocation4] sm:$0xff]  ;;  %2016 = vset.pattern.permute.xlu0 %v2073_v24  ;;  %v1708_v28 = vld [vmem:[%s2506_s27 + $0x18] sm:$0xff] }
 0x54f   : > { %1675 = vmatpush.msra.mxu3 %v1632_v20  ;;  %v1544_v13 = vld [vmem:[%s2504_s0] sm:$0xff]  ;;  %v1707_v26 = vld [vmem:[%s2506_s27 + $0x10] sm:$0xff]  ;;  %v1706_v31 = vld [vmem:[%s2506_s27 + $0x8] sm:$0xff] }
 0x550   : > { %v1553_v21 = vld [vmem:[%s2469_s21] sm:$0xff]  ;;  %1653 = vmatpush.msra.mxu2 %v1635_v29  ;;  %1924 = vmatmul.msk.f32.vlgmr.msra.gmra.mxu3 %vm965_vm5, %v1544_v13  ;;  %v1604_v40 = vld [vmem:[%s2509_s15 + $0x18] sm:$0xff]  ;;  %v1603_v41 = vld [vmem:[%s2509_s15 + $0x10] sm:$0xff] }
 0x551   : > { %v1633_v22 = vld [vmem:[%s2462_s14] sm:$0xff]  ;;  %1576 = vmatpush.msra.mxu0 %v1553_v21  ;;  %1624 = vmatpush.msra.mxu1 %v1604_v40  ;;  %v1602_v45 = vld [vmem:[%s2509_s15 + $0x8] sm:$0xff]  ;;  %v2020_v15 = vld [vmem:[#allocation5] ss:$0 sm:$0xff] }
 0x552   : > { %1654 = vmatpush.msra.mxu2 %v1634_v10  ;;  %1920 = vmatmul.msk.f32.vlgmr.msra.gmra.mxu0 %vm965_vm5, %v1544_v13  ;;  %v1546_v27 = vld [vmem:[%s2505_s5] sm:$0xff] }
 0x553   : > { %1549 = vperm.xlu0 %2016, %v1546_v27   ;;  %1728 = vmatpush.msrb.mxu0 %v1708_v28  ;;  %v1705_v32 = vld [vmem:[%s2506_s27] sm:$0xff] }
 0x554   : > { %1655 = vmatpush.msra.mxu2 %v1633_v22  ;;  %v2017_v34 = vld [vmem:[%s2507_s28] ss:$0 sm:$0xff]  ;;  %1625 = vmatpush.msra.mxu1 %v1603_v41 }
 0x555   : > { %1923 = vmatmul.msk.f32.vlgmr.msra.gmra.mxu2 %vm1169_vm4, %v2397_v23  ;;  %1729 = vmatpush.msrb.mxu0 %v1707_v26  ;;  %v2018_v38 = vld [vmem:[%s2508_s29] ss:$0 sm:$0xff] }
 0x556   : > { %v1601_v47 = vld [vmem:[%s2509_s15] sm:$0xff]  ;;  %1626 = vmatpush.msra.mxu1 %v1602_v45 }
 0x557   : > { %1730 = vmatpush.msrb.mxu0 %v1706_v31  ;;  %v2019_v12 = vld [vmem:[%s2510_s26] ss:$0 sm:$0xff] }
 0x558   : > { %1627 = vmatpush.msra.mxu1 %v1601_v47 }
 0x559   : > { %1731 = vmatpush.msrb.mxu0 %v1705_v32 }
 0x5c5   : > { %v1550_v9 = vpop.permute.xlu0 %1549 }
 0x5c6   : > { %v1552_v11 = vmul.f32 %v1550_v9, %v2397_v23 }
 0x5c8   : > { %1737 = vrot.lane.b32.xlu0 %v1552_v11, %s2074_s8 }
 0x5cf   : > { %v1578_v39 = vpop.f32.mrf.mxu0 }
 0x5d0   : > { %v1579_v44 = vadd.f32 %v2018_v38, %v1578_v39 }
 0x5d2   : > { %v1921_v46 = vmul.f32 -1.442695, %v1579_v44 }
 0x5d3   : > { %v1677_v33 = vpop.f32.mrf.mxu3 }
 0x5d8   : > { %v1657_v35 = vpop.f32.mrf.mxu2 }
 0x5d9   : > { %v1678_v36 = vadd.f32 %v1677_v33, %v1657_v35 }
 0x5db   : > { %v1684_v37 = vadd.f32 %v2017_v34, %v1678_v36 }
 0x5dd   : > { %v1925_v43 = vmul.f32 -1.442695, %v1684_v37 }
 0x5df   : > { %2021 = vpow2.f32 %v1925_v43 }
 0x5e0   : > { %2023 = vpow2.f32 %v1921_v46 }
 0x5e5   : > { %v2022_v42 = vpop.eup %2021 }
 0x5e6   : > { %v1688_v48 = vadd.f32 1.0, %v2022_v42  ;;  %v2024_v49 = vpop.eup %2023 }
 0x5e7   : > { %v1584_v50 = vadd.f32 1.0, %v2024_v49 }
 0x5e8   : > { %2025 = vrcp.f32 %v1688_v48  ;;  %v1700_v55 = vand.u32 2147483648, %v1688_v48  ;;  %v1698_v59 = vand.u32 2147483647, %v1688_v48  ;;  %vm1694_vm8 = vweird.f32 %v1688_v48 }
 0x5e9   : > { %2027 = vrcp.f32 %v1584_v50  ;;  %v1596_v60 = vand.u32 2147483648, %v1584_v50  ;;  %vm1590_vm6 = vweird.f32 %v1584_v50  ;;  %v1594_v62 = vand.u32 2147483647, %v1584_v50 }
 0x5ea   : > { %v1701_v0 = vor.u32 1.1754944e-38, %v1700_v55  ;;  %vm1699_vm10 = vcmp.eq.f32.partialorder %v1698_v59, 8.507059e+37 }
 0x5eb   : > { %v1597_v57 = vor.u32 1.1754944e-38, %v1596_v60  ;;  %vm1595_vm12 = vcmp.eq.f32.partialorder %v1594_v62, 8.507059e+37 }
 0x5ee   : > { %v2026_v51 = vpop.eup %2025 }
 0x5ef   : > { %v1690_v52 = vmul.f32 %v2026_v51, %v1688_v48  ;;  %v2028_v53 = vpop.eup %2027  ;;  %vm1695_vm5 = vweird.f32 %v2026_v51 }
 0x5f0   : > { %v1586_v56 = vmul.f32 %v2028_v53, %v1584_v50  ;;  %vm1591_vm7 = vweird.f32 %v2028_v53  ;;  %vm1696_vm9 = vmor %vm1694_vm8, %vm1695_vm5 }
 0x5f1   : > { %v1691_v54 = vsub.f32 1.0, %v1690_v52  ;;  %vm1592_vm11 = vmor %vm1590_vm6, %vm1591_vm7 }
 0x5f2   : > { %v1587_v61 = vsub.f32 1.0, %v1586_v56 }
 0x5f3   : > { %v1692_v58 = vmul.f32 %v2026_v51, %v1691_v54 }
 0x5f4   : > { %v1588_v1 = vmul.f32 %v2028_v53, %v1587_v61 }
 0x5f5   : > { %v1693_v63 = vadd.f32 %v2026_v51, %v1692_v58 }
 0x5f6   : > { %v1589_v4 = vadd.f32 %v2028_v53, %v1588_v1 }
 0x5f7   : > { %v1697_v2 = vsel %vm1696_vm9, %v2026_v51, %v1693_v63 }
 0x5f8   : > { %v1702_v3 = vsel %vm1699_vm10, %v1701_v0, %v1697_v2  ;;  %v1593_v6 = vsel %vm1592_vm11, %v2028_v53, %v1589_v4 }
 0x5f9   : > { %v1704_v5 = vmul.f32 %v1702_v3, %v1684_v37  ;;  %v1598_v7 = vsel %vm1595_vm12, %v1597_v57, %v1593_v6 }
 0x5fa   : > { %v1600_v8 = vmul.f32 %v1598_v7, %v1579_v44 }
 0x5fb   : > { %1926 = vmatmul.msk.f32.vlgmr.msrb.gmra.mxu0 %vm1169_vm4, %v1704_v5 }
 0x5fc   : > { %1922 = vmatmul.msk.f32.vlgmr.msra.gmra.mxu1 %vm1169_vm4, %v1600_v8  ;;  %vm1748_vm4 = vcmask 97280  }
 0x63a   : > { %v1738_v18 = vpop.permute.xlu0 %1737 }
 0x678   : > { %v1733_v14 = vpop.f32.mrf.mxu0 }
 0x679   : > { %v1734_v25 = vadd.f32 %v2019_v12, %v1733_v14  ;;  %v1629_v16 = vpop.f32.mrf.mxu1 }
 0x67a   : > { %v1630_v17 = vadd.f32 %v2020_v15, %v1629_v16 }
 0x67b   : > { %1741 = vrot.lane.b32.xlu1 %v1734_v25, %s2075_s24 }
 0x67c   : > { %v1745_v19 = vsel %vm1744_vm13, %v1630_v17, %v1738_v18 }
 0x6ed   : > { %v1742_v30 = vpop.permute.xlu1 %1741 }
 0x6ee   : > { %v1747_v29 = vsel %vm1746_vm14, %v1745_v19, %v1742_v30 }
 0x6ef   : > { %v1749_v10 = vsel %vm1748_vm4, %v1747_v29, 0.0 }
 0x6f0   : > { %1750 = vst [vmem:[#allocation6] sm:$0xff] %v1749_v10 }
 0x6f1 PF: > { %p1942_p7 = scmp.eq.s32.totalorder %s2216_s30, 1  ;;  %s2076_s1 = smov [#allocation6]  }
 0x6f2   : > { %s1757_s4 = sshll.u32 %s2076_s1, 4  ;;  %s2511_s0 = sld [smem:[#allocation25_spill]]  ;;  %s1758_s4 = int_to_ptr.vmem [resolvable:$true] %s1757_s4 }
 0x6f8   : > { %s1759_s29 = sshll.u32 %s2511_s0, 4  ;;  %s1760_s29 = int_to_ptr.hbm [resolvable:$true] %s1759_s29 }
 0x6f9   : > { %1939 = dma.vmem_to_hbm [thread:$0]  (%p1942_p7), %s1758_s4, 128, %s1760_s29, [#allocation7]  }
 0x6fa   : > { %2062 = dma.done.wait (%p1942_p7), [#allocation7], 128  }
 0x6fb   : > { %2064 = vsyncadd (%p1942_p7), [#allocation7], 4294967168 }
 0x6fc PF: > { %s2512_s17 = sld [smem:[#allocation9_spill]] }
 0x702   : > { %s38_s6 = sadd.s32 1, %s2512_s17  }
 0x703   : > { %p35_p8 = scmp.ge.s32.totalorder %s38_s6, 4  }
 0x705   :  { %37 = sbr.rel (!%p35_p8) target bundleno = 18 (0x12), region = 167 }
 0x70a   :  { %1773 = vsyncpa [#allocation7], 1 }
 0x70b   :  { %1775 = vsyncpa [#allocation7 + $0x1], 1 }

</bundles_post_ra>
